<compile_context>
chip_gen: v5e
topology: v5e:2x2
jax: 0.10.0
libtpu: 0.0.40
codegen_flags: <defaults>
</compile_context>

<pallas_src>
import numpy as np
import jax
import jax.numpy as jnp
from jax import lax
from jax.experimental import pallas as pl
from jax.experimental.pallas import tpu as pltpu

HIDDEN = 256
HALF = HIDDEN // 2              # 128
L_POS = 10
L_DIR = 4
POS_ENC = 3 * (1 + 2 * L_POS)   # 63
DIR_ENC = 3 * (1 + 2 * L_DIR)   # 27
ENC = POS_ENC + DIR_ENC         # 90
ENC_PAD = 128                   # lane-dense padded encoding width
N_SAMPLES = 64
LATENT = 64
STATE_H = LATENT // 2           # 32
DELTA = 4.0 / (N_SAMPLES - 1)   # constant spacing of linspace(2, 6, 64)
EPS = 1e-10
MAX_RAYS_PER_TILE = 32          # 32 rays * 64 samples = 2048 point rows / step


# ----------------------------------------------------------------------------
# Fused kernel.  One grid step = R whole rays (= R batch items) = R*64 point
# rows.  Writes the (R, LATENT) output rows for those items.
# ----------------------------------------------------------------------------
def _fr3_fused_kernel(enc_ref, joints_ref, dircol_ref,
                      w1_ref, b1_ref, w2_ref, b2_ref, w3_ref, b3_ref,
                      wc1hd_ref, bc1d_ref, wc2_ref, bc2_ref,
                      ws1_ref, bs1_ref, ws2_ref, bs2_ref,
                      wfv_ref, wfs_ref, bfu_ref,
                      tri_ref, smask_ref,
                      out_ref):
    f32 = jnp.float32
    b16 = lambda x: x.astype(jnp.bfloat16)
    dot = lambda a, b: jnp.dot(a, b, preferred_element_type=f32)

    R = dircol_ref.shape[0]          # rays in this tile
    TM = enc_ref.shape[0]            # R * N_SAMPLES point rows

    enc = enc_ref[...]                                               # (TM, 128) bf16

    # --- NeRF MLP: bf16 operands on the MXU, f32 accumulation ---------------
    h = jnp.maximum(dot(enc, w1_ref[...]) + b1_ref[...], 0.0)        # (TM, 256)
    h = jnp.maximum(dot(b16(h), w2_ref[...]) + b2_ref[...], 0.0)
    h = jnp.maximum(dot(b16(h), w3_ref[...]) + b3_ref[...], 0.0)

    # color hidden + density head fused into one 256 -> 129 matmul
    hd = dot(b16(h), wc1hd_ref[...]) + bc1d_ref[...]                 # (TM, 129)

    # per-ray direction->color contribution (hoisted to the wrapper),
    # broadcast over the 64 samples of each ray (VPU work, hides under MXU)
    dc = dircol_ref[...]                                             # (R, 128) f32
    dc_pp = jnp.broadcast_to(dc[:, None, :],
                             (R, N_SAMPLES, HALF)).reshape(TM, HALF)
    c = jnp.maximum(hd[:, :HALF] + dc_pp, 0.0)                       # (TM, 128)
    logits = dot(b16(c), wc2_ref[...]) + bc2_ref[...]                # (TM, 3)
    rgb = pl.reciprocal(1.0 + jnp.exp(-logits), approx=True)         # Sigmoid (EUP)

    # --- volume rendering in per-ray (R, 64) layout --------------------------
    dens = jnp.reshape(hd[:, HALF:], (R, N_SAMPLES))                 # (R, 64), no activation
    t = jnp.exp(-dens * DELTA)                                       # == 1 - alpha
    alpha = 1.0 - t
    logt = jnp.log(t + EPS)
    # inclusive per-ray cumsum via a (64, 64) upper-triangular matmul; the
    # bf16 hi/lo split keeps ~f32 accuracy on the bf16 MXU.
    logt_hi = b16(logt)
    logt_lo = b16(logt - logt_hi.astype(f32))
    tri = tri_ref[...]                                               # (64, 64) bf16
    cum = dot(logt_hi, tri) + dot(logt_lo, tri)                      # (R, 64)
    w = alpha * jnp.exp(cum) * smask_ref[...]                        # sample 63 masked out

    # per-ray weighted colour sum: batched (1,64)x(64,3) matmul, f32 accumulate
    rgb_ray = jnp.reshape(rgb, (R, N_SAMPLES, 3))                    # free row-split
    rgb_final = lax.dot_general(
        b16(w).reshape(R, 1, N_SAMPLES), b16(rgb_ray),
        dimension_numbers=(((2,), (1,)), ((0,), (0,))),
        preferred_element_type=f32).reshape(R, 3)                    # (R, 3)
    # TODO(synk): torch's rgb_final.mean(1) is (B,), which cannot cat with the
    # (B,32) state features; interpreted as a keepdim mean -> (R, 1).
    visual = jnp.mean(rgb_final, axis=1, keepdims=True)              # (R, 1)

    # --- state encoder + fusion ----------------------------------------------
    sf = jnp.maximum(dot(joints_ref[...], ws1_ref[...]) + bs1_ref[...], 0.0)
    sf = dot(b16(sf), ws2_ref[...]) + bs2_ref[...]                   # (R, 32)
    # fusion: cat([visual, sf]) @ Wf  ==  visual * Wf[:1] + sf @ Wf[1:]
    out_ref[...] = visual * wfv_ref[...] + dot(b16(sf), wfs_ref[...]) + bfu_ref[...]


# ----------------------------------------------------------------------------
# JAX glue (matches FR3NeRFEncoder.forward)
# ----------------------------------------------------------------------------
def positional_encoding(x, L):
    encs = [x]
    for i in range(L):
        encs.append(jnp.sin((2.0 ** i) * jnp.pi * x))
        encs.append(jnp.cos((2.0 ** i) * jnp.pi * x))
    return jnp.concatenate(encs, axis=-1)


def _pack_weights(p):
    """Pack params into MXU-friendly, bf16 operand matrices (f32 biases)."""
    b16 = jnp.bfloat16
    w1p = jnp.concatenate(
        [p["w1"], jnp.zeros((ENC_PAD - ENC, HIDDEN), jnp.float32)], axis=0)
    wc1_pos = p["wc1"][:HIDDEN]
    return (
        w1p.astype(b16), p["b1"],
        p["w2"].astype(b16), p["b2"],
        p["w3"].astype(b16), p["b3"],
        jnp.concatenate([wc1_pos, p["wd"]], axis=1).astype(b16),     # (256, 129)
        jnp.concatenate([p["bc1"], p["bd"]], axis=1),                # (1, 129)
        p["wc2"].astype(b16), p["bc2"],
        p["ws1"].astype(b16), p["bs1"],
        p["ws2"].astype(b16), p["bs2"],
        p["wf"][:1],                                                 # (1, 64) f32
        p["wf"][1:].astype(b16), p["bf"],
    )


def _const_spec(a):
    zeros = (0,) * a.ndim
    return pl.BlockSpec(a.shape, lambda i: zeros)


def _fr3_forward(images, joint_states, camera_poses, params):
    del images  # TODO(synk): images is never read by the reference forward()
    B = camera_poses.shape[0]
    b16 = jnp.bfloat16

    # --- rays, sample points, encodings (cheap XLA-side prep) ----------------
    rays_o = camera_poses[:, :3, 3]
    rays_d = camera_poses[:, :3, :3] @ jnp.array([0.0, 0.0, -1.0], jnp.float32)
    z_vals = jnp.linspace(2.0, 6.0, N_SAMPLES, dtype=jnp.float32)
    points = rays_o[:, None, :] + rays_d[:, None, :] * z_vals[:, None]     # (B, 64, 3)
    pe = positional_encoding(points.reshape(-1, 3), L_POS)                 # (B*64, 63)
    # TODO(synk): forward() passes rays_d.reshape(-1,3) (B rows) into a cat with
    # B*64 encoded points, which is ill-formed in PyTorch; the ray direction is
    # broadcast across depth samples (standard NeRF behaviour).
    de_ray = positional_encoding(rays_d, L_DIR)                            # (B, 27)
    de_pp = jnp.broadcast_to(de_ray[:, None, :],
                             (B, N_SAMPLES, DIR_ENC)).reshape(-1, DIR_ENC)
    enc = jnp.concatenate(
        [pe, de_pp, jnp.zeros((B * N_SAMPLES, ENC_PAD - ENC), jnp.float32)],
        axis=-1)                                                           # (B*64, 128)

    # per-ray direction -> color-hidden contribution (hoisted: identical for
    # all 64 samples of a ray); bias bc1 is added inside the kernel.
    dir_color = jnp.dot(de_ray.astype(b16), params["wc1"][HIDDEN:].astype(b16),
                        preferred_element_type=jnp.float32)                # (B, 128)

    # --- tiling: whole rays per tile; >= 2 grid steps so v7x megacore splits --
    if B == 1:
        n_tiles, r_tile = 1, 1
    else:
        n_tiles = max(2, -(-B // MAX_RAYS_PER_TILE))
        r_tile = -(-B // n_tiles)
    b_pad = n_tiles * r_tile
    tm = r_tile * N_SAMPLES

    joints = joint_states
    if b_pad != B:
        enc = jnp.pad(enc, ((0, (b_pad - B) * N_SAMPLES), (0, 0)))
        joints = jnp.pad(joints, ((0, b_pad - B), (0, 0)))
        dir_color = jnp.pad(dir_color, ((0, b_pad - B), (0, 0)))
    enc = enc.astype(b16)                                                  # (b_pad*64, 128)
    joints3 = joints.astype(b16).reshape(n_tiles, r_tile, joints.shape[-1])
    dircol3 = dir_color.reshape(n_tiles, r_tile, HALF)

    # constant rendering matrices (tiny, VMEM resident)
    tri = jnp.asarray(np.triu(np.ones((N_SAMPLES, N_SAMPLES), np.float32)),
                      dtype=b16)                                           # (64, 64)
    smask = jnp.asarray(
        (np.arange(N_SAMPLES) < N_SAMPLES - 1).astype(np.float32)[None, :])  # (1, 64)

    consts = (*_pack_weights(params), tri, smask)

    in_specs = ([pl.BlockSpec((tm, ENC_PAD), lambda i: (i, 0)),
                 pl.BlockSpec((None, r_tile, joints3.shape[-1]),
                              lambda i: (i, 0, 0)),
                 pl.BlockSpec((None, r_tile, HALF), lambda i: (i, 0, 0))]
                + [_const_spec(a) for a in consts])

    out = pl.pallas_call(
        _fr3_fused_kernel,
        grid=(n_tiles,),
        in_specs=in_specs,
        out_specs=pl.BlockSpec((None, r_tile, LATENT), lambda i: (i, 0, 0)),
        out_shape=jax.ShapeDtypeStruct((n_tiles, r_tile, LATENT), jnp.float32),
        compiler_params=pltpu.CompilerParams(
            dimension_semantics=("parallel",),
            vmem_limit_bytes=48 * 1024 * 1024),
    )(enc, joints3, dircol3, *consts)
    return out.reshape(b_pad, LATENT)[:B]


fr3_nerf_encoder = jax.jit(_fr3_forward)


# ----------------------------------------------------------------------------
# Deterministic parameter init (PyTorch Linear default: U(-1/sqrt(fan_in), ..))
# ----------------------------------------------------------------------------
def init_params(key):
    def linear(k, fan_in, fan_out):
        kw, kb = jax.random.split(k)
        lim = 1.0 / (fan_in ** 0.5)
        w = jax.random.uniform(kw, (fan_in, fan_out), jnp.float32, -lim, lim)
        b = jax.random.uniform(kb, (1, fan_out), jnp.float32, -lim, lim)
        return w, b

    keys = jax.random.split(key, 9)
    # TODO(synk): the PyTorch __init__ declares Linear(6,256), Linear(259,128)
    # and Linear(160,64), inconsistent with what forward() actually feeds them
    # (90, 283 and 1+32 features); weights are sized from the real data flow.
    w1, b1 = linear(keys[0], ENC, HIDDEN)
    w2, b2 = linear(keys[1], HIDDEN, HIDDEN)
    w3, b3 = linear(keys[2], HIDDEN, HIDDEN)
    wd, bd = linear(keys[3], HIDDEN, 1)
    wc1, bc1 = linear(keys[4], HIDDEN + DIR_ENC, HALF)
    wc2, bc2 = linear(keys[5], HALF, 3)
    ws1, bs1 = linear(keys[6], 14, 32)
    ws2, bs2 = linear(keys[7], 32, STATE_H)
    wf, bf = linear(keys[8], 1 + STATE_H, LATENT)
    return dict(w1=w1, b1=b1, w2=w2, b2=b2, w3=w3, b3=b3, wd=wd, bd=bd,
                wc1=wc1, bc1=bc1, wc2=wc2, bc2=bc2, ws1=ws1, bs1=bs1,
                ws2=ws2, bs2=bs2, wf=wf, bf=bf)


# ----------------------------------------------------------------------------
# Pure-JAX reference: same module math, same bf16-operand / f32-accumulate
# matmul policy as the kernel (rendering via true f32 cumprod, exact sigmoid).
# ----------------------------------------------------------------------------
def reference_forward(joint_states, camera_poses, p):
    b16 = lambda x: x.astype(jnp.bfloat16)
    mm = lambda a, b: jnp.dot(b16(a), b16(b), preferred_element_type=jnp.float32)
    relu = jax.nn.relu
    B = camera_poses.shape[0]

    rays_o = camera_poses[:, :3, 3]
    rays_d = camera_poses[:, :3, :3] @ jnp.array([0.0, 0.0, -1.0], jnp.float32)
    z_vals = jnp.linspace(2.0, 6.0, N_SAMPLES, dtype=jnp.float32)
    points = rays_o[:, None, :] + rays_d[:, None, :] * z_vals[:, None]
    pe = positional_encoding(points.reshape(-1, 3), L_POS)
    de_ray = positional_encoding(rays_d, L_DIR)
    de = jnp.broadcast_to(de_ray[:, None, :],
                          (B, N_SAMPLES, DIR_ENC)).reshape(-1, DIR_ENC)
    enc = jnp.concatenate([pe, de], axis=-1)

    h = relu(mm(enc, p["w1"]) + p["b1"])
    h = relu(mm(h, p["w2"]) + p["b2"])
    h = relu(mm(h, p["w3"]) + p["b3"])
    dens = mm(h, p["wd"]) + p["bd"]
    c = relu(mm(h, p["wc1"][:HIDDEN]) + mm(de, p["wc1"][HIDDEN:]) + p["bc1"])
    rgb = jax.nn.sigmoid(mm(c, p["wc2"]) + p["bc2"])

    rgb = rgb.reshape(B, N_SAMPLES, 3)
    dens = dens.reshape(B, N_SAMPLES)
    delta = z_vals[1:] - z_vals[:-1]
    alpha = 1.0 - jnp.exp(-dens[:, :-1] * delta)
    weights = alpha * jnp.cumprod(1.0 - alpha + EPS, axis=-1)
    rgb_final = jnp.sum(weights[..., None] * rgb[:, :-1, :], axis=-2)
    visual = jnp.mean(rgb_final, axis=1, keepdims=True)

    sf = relu(mm(joint_states, p["ws1"]) + p["bs1"])
    sf = mm(sf, p["ws2"]) + p["bs2"]
    return visual * p["wf"][:1] + mm(sf, p["wf"][1:]) + p["bf"]


if __name__ == "__main__":
    key = jax.random.PRNGKey(0)
    k_img, k_js, k_cp = jax.random.split(key, 3)
    B = 2
    images = jax.random.normal(k_img, (B, 3, 16, 16), jnp.float32)        # NCHW, unused
    joint_states = jax.random.normal(k_js, (B, 14), jnp.float32)
    camera_poses = (jnp.broadcast_to(jnp.eye(4, dtype=jnp.float32), (B, 4, 4))
                    + 0.1 * jax.random.normal(k_cp, (B, 4, 4), jnp.float32))
    params = init_params(jax.random.PRNGKey(42))

    out = fr3_nerf_encoder(images, joint_states, camera_poses, params)
    out = jax.block_until_ready(out)
    assert out.shape == (B, LATENT)

    # Numerical sanity check.  Tolerance covers the approximate EUP reciprocal
    # in the sigmoid, the bf16-operand weighted-colour sum and the hi/lo
    # log/exp segmented-cumprod path (<~1e-3 abs on the output).
    ref = reference_forward(joint_states, camera_poses, params)
    if not bool(jnp.allclose(out, ref, rtol=2e-2, atol=5e-3)):
        raise AssertionError(
            f"kernel/reference mismatch, max abs err = "
            f"{float(jnp.max(jnp.abs(out - ref)))}")
    print("KERNEL_OK")
</pallas_src>

<mosaic_0001>
module attributes {stable_mosaic.version = 11 : i64} {
  func.func @_fr3_fused_kernel(%arg0: i32, %arg1: memref<64x128xbf16, #tpu.memory_space<vmem>>, %arg2: memref<1x1x14xbf16, #tpu.memory_space<vmem>>, %arg3: memref<1x1x128xf32, #tpu.memory_space<vmem>>, %arg4: memref<128x256xbf16, #tpu.memory_space<vmem>>, %arg5: memref<1x256xf32, #tpu.memory_space<vmem>>, %arg6: memref<256x256xbf16, #tpu.memory_space<vmem>>, %arg7: memref<1x256xf32, #tpu.memory_space<vmem>>, %arg8: memref<256x256xbf16, #tpu.memory_space<vmem>>, %arg9: memref<1x256xf32, #tpu.memory_space<vmem>>, %arg10: memref<256x129xbf16, #tpu.memory_space<vmem>>, %arg11: memref<1x129xf32, #tpu.memory_space<vmem>>, %arg12: memref<128x3xbf16, #tpu.memory_space<vmem>>, %arg13: memref<1x3xf32, #tpu.memory_space<vmem>>, %arg14: memref<14x32xbf16, #tpu.memory_space<vmem>>, %arg15: memref<1x32xf32, #tpu.memory_space<vmem>>, %arg16: memref<32x32xbf16, #tpu.memory_space<vmem>>, %arg17: memref<1x32xf32, #tpu.memory_space<vmem>>, %arg18: memref<1x64xf32, #tpu.memory_space<vmem>>, %arg19: memref<32x64xbf16, #tpu.memory_space<vmem>>, %arg20: memref<1x64xf32, #tpu.memory_space<vmem>>, %arg21: memref<64x64xbf16, #tpu.memory_space<vmem>>, %arg22: memref<1x64xf32, #tpu.memory_space<vmem>>, %arg23: memref<1x1x64xf32, #tpu.memory_space<vmem>>) attributes {dimension_semantics = [#tpu.dimension_semantics<parallel>], iteration_bounds = array<i64: 2>, scalar_prefetch = 0 : i64, scratch_operands = 0 : i64, tpu.core_type = #tpu.core_type<tc>, window_params = [{transform_indices = @transform_0, window_bounds = array<i64: 64, 128>}, {transform_indices = @transform_1, window_bounds = array<i64: 1, 1, 14>}, {transform_indices = @transform_2, window_bounds = array<i64: 1, 1, 128>}, {pipeline_mode = #tpu.pipeline_mode<synchronous>, transform_indices = @transform_3, window_bounds = array<i64: 128, 256>}, {pipeline_mode = #tpu.pipeline_mode<synchronous>, transform_indices = @transform_4, window_bounds = array<i64: 1, 256>}, {pipeline_mode = #tpu.pipeline_mode<synchronous>, transform_indices = @transform_5, window_bounds = array<i64: 256, 256>}, {pipeline_mode = #tpu.pipeline_mode<synchronous>, transform_indices = @transform_6, window_bounds = array<i64: 1, 256>}, {pipeline_mode = #tpu.pipeline_mode<synchronous>, transform_indices = @transform_7, window_bounds = array<i64: 256, 256>}, {pipeline_mode = #tpu.pipeline_mode<synchronous>, transform_indices = @transform_8, window_bounds = array<i64: 1, 256>}, {pipeline_mode = #tpu.pipeline_mode<synchronous>, transform_indices = @transform_9, window_bounds = array<i64: 256, 129>}, {pipeline_mode = #tpu.pipeline_mode<synchronous>, transform_indices = @transform_10, window_bounds = array<i64: 1, 129>}, {pipeline_mode = #tpu.pipeline_mode<synchronous>, transform_indices = @transform_11, window_bounds = array<i64: 128, 3>}, {pipeline_mode = #tpu.pipeline_mode<synchronous>, transform_indices = @transform_12, window_bounds = array<i64: 1, 3>}, {pipeline_mode = #tpu.pipeline_mode<synchronous>, transform_indices = @transform_13, window_bounds = array<i64: 14, 32>}, {pipeline_mode = #tpu.pipeline_mode<synchronous>, transform_indices = @transform_14, window_bounds = array<i64: 1, 32>}, {pipeline_mode = #tpu.pipeline_mode<synchronous>, transform_indices = @transform_15, window_bounds = array<i64: 32, 32>}, {pipeline_mode = #tpu.pipeline_mode<synchronous>, transform_indices = @transform_16, window_bounds = array<i64: 1, 32>}, {pipeline_mode = #tpu.pipeline_mode<synchronous>, transform_indices = @transform_17, window_bounds = array<i64: 1, 64>}, {pipeline_mode = #tpu.pipeline_mode<synchronous>, transform_indices = @transform_18, window_bounds = array<i64: 32, 64>}, {pipeline_mode = #tpu.pipeline_mode<synchronous>, transform_indices = @transform_19, window_bounds = array<i64: 1, 64>}, {pipeline_mode = #tpu.pipeline_mode<synchronous>, transform_indices = @transform_20, window_bounds = array<i64: 64, 64>}, {pipeline_mode = #tpu.pipeline_mode<synchronous>, transform_indices = @transform_21, window_bounds = array<i64: 1, 64>}, {transform_indices = @transform_22, window_bounds = array<i64: 1, 1, 64>}]} {
    %c0 = arith.constant 0 : index
    %c0_0 = arith.constant 0 : index
    %0 = vector.load %arg1[%c0, %c0_0] : memref<64x128xbf16, #tpu.memory_space<vmem>>, vector<64x128xbf16>
    %c0_1 = arith.constant 0 : index
    %c0_2 = arith.constant 0 : index
    %1 = vector.load %arg4[%c0_1, %c0_2] : memref<128x256xbf16, #tpu.memory_space<vmem>>, vector<128x256xbf16>
    %cst = arith.constant dense<0.000000e+00> : vector<64x256xf32>
    %2 = tpu.matmul %0, %1, %cst {dimension_numbers = #tpu.dot_dimension_numbers<[1], [0], [0], [1], [0, 0, 1, 1], [], []>} : vector<64x128xbf16>, vector<128x256xbf16>, vector<64x256xf32> -> vector<64x256xf32>
    %c0_3 = arith.constant 0 : index
    %c0_4 = arith.constant 0 : index
    %3 = vector.load %arg5[%c0_3, %c0_4] : memref<1x256xf32, #tpu.memory_space<vmem>>, vector<1x256xf32>
    %4 = vector.broadcast %3 : vector<1x256xf32> to vector<64x256xf32>
    %5 = arith.addf %2, %4 : vector<64x256xf32>
    %cst_5 = arith.constant 0.000000e+00 : f32
    %6 = vector.broadcast %cst_5 : f32 to vector<64x256xf32>
    %7 = arith.maximumf %5, %6 : vector<64x256xf32>
    %8 = arith.truncf %7 : vector<64x256xf32> to vector<64x256xbf16>
    %c0_6 = arith.constant 0 : index
    %c0_7 = arith.constant 0 : index
    %9 = vector.load %arg6[%c0_6, %c0_7] : memref<256x256xbf16, #tpu.memory_space<vmem>>, vector<256x256xbf16>
    %cst_8 = arith.constant dense<0.000000e+00> : vector<64x256xf32>
    %10 = tpu.matmul %8, %9, %cst_8 {dimension_numbers = #tpu.dot_dimension_numbers<[1], [0], [0], [1], [0, 0, 1, 1], [], []>} : vector<64x256xbf16>, vector<256x256xbf16>, vector<64x256xf32> -> vector<64x256xf32>
    %c0_9 = arith.constant 0 : index
    %c0_10 = arith.constant 0 : index
    %11 = vector.load %arg7[%c0_9, %c0_10] : memref<1x256xf32, #tpu.memory_space<vmem>>, vector<1x256xf32>
    %12 = vector.broadcast %11 : vector<1x256xf32> to vector<64x256xf32>
    %13 = arith.addf %10, %12 : vector<64x256xf32>
    %cst_11 = arith.constant 0.000000e+00 : f32
    %14 = vector.broadcast %cst_11 : f32 to vector<64x256xf32>
    %15 = arith.maximumf %13, %14 : vector<64x256xf32>
    %16 = arith.truncf %15 : vector<64x256xf32> to vector<64x256xbf16>
    %c0_12 = arith.constant 0 : index
    %c0_13 = arith.constant 0 : index
    %17 = vector.load %arg8[%c0_12, %c0_13] : memref<256x256xbf16, #tpu.memory_space<vmem>>, vector<256x256xbf16>
    %cst_14 = arith.constant dense<0.000000e+00> : vector<64x256xf32>
    %18 = tpu.matmul %16, %17, %cst_14 {dimension_numbers = #tpu.dot_dimension_numbers<[1], [0], [0], [1], [0, 0, 1, 1], [], []>} : vector<64x256xbf16>, vector<256x256xbf16>, vector<64x256xf32> -> vector<64x256xf32>
    %c0_15 = arith.constant 0 : index
    %c0_16 = arith.constant 0 : index
    %19 = vector.load %arg9[%c0_15, %c0_16] : memref<1x256xf32, #tpu.memory_space<vmem>>, vector<1x256xf32>
    %20 = vector.broadcast %19 : vector<1x256xf32> to vector<64x256xf32>
    %21 = arith.addf %18, %20 : vector<64x256xf32>
    %cst_17 = arith.constant 0.000000e+00 : f32
    %22 = vector.broadcast %cst_17 : f32 to vector<64x256xf32>
    %23 = arith.maximumf %21, %22 : vector<64x256xf32>
    %24 = arith.truncf %23 : vector<64x256xf32> to vector<64x256xbf16>
    %c0_18 = arith.constant 0 : index
    %c0_19 = arith.constant 0 : index
    %25 = vector.load %arg10[%c0_18, %c0_19] : memref<256x129xbf16, #tpu.memory_space<vmem>>, vector<256x129xbf16>
    %cst_20 = arith.constant dense<0.000000e+00> : vector<64x129xf32>
    %26 = tpu.matmul %24, %25, %cst_20 {dimension_numbers = #tpu.dot_dimension_numbers<[1], [0], [0], [1], [0, 0, 1, 1], [], []>} : vector<64x256xbf16>, vector<256x129xbf16>, vector<64x129xf32> -> vector<64x129xf32>
    %c0_21 = arith.constant 0 : index
    %c0_22 = arith.constant 0 : index
    %27 = vector.load %arg11[%c0_21, %c0_22] : memref<1x129xf32, #tpu.memory_space<vmem>>, vector<1x129xf32>
    %28 = vector.broadcast %27 : vector<1x129xf32> to vector<64x129xf32>
    %29 = arith.addf %26, %28 : vector<64x129xf32>
    %c0_23 = arith.constant 0 : index
    %c0_24 = arith.constant 0 : index
    %c0_25 = arith.constant 0 : index
    %30 = vector.load %arg3[%c0_23, %c0_24, %c0_25] : memref<1x1x128xf32, #tpu.memory_space<vmem>>, vector<1x1x128xf32>
    %31 = vector.shape_cast %30 : vector<1x1x128xf32> to vector<1x128xf32>
    %32 = vector.shape_cast %31 : vector<1x128xf32> to vector<1x1x128xf32>
    %33 = vector.shape_cast %32 : vector<1x1x128xf32> to vector<1x1x128xf32>
    %34 = vector.broadcast %33 : vector<1x1x128xf32> to vector<1x64x128xf32>
    %35 = vector.shape_cast %34 : vector<1x64x128xf32> to vector<64x128xf32>
    %36 = vector.extract_strided_slice %29 {offsets = [0, 0], sizes = [64, 128], strides = [1, 1]} : vector<64x129xf32> to vector<64x128xf32>
    %37 = arith.addf %36, %35 : vector<64x128xf32>
    %cst_26 = arith.constant 0.000000e+00 : f32
    %38 = vector.broadcast %cst_26 : f32 to vector<64x128xf32>
    %39 = arith.maximumf %37, %38 : vector<64x128xf32>
    %40 = arith.truncf %39 : vector<64x128xf32> to vector<64x128xbf16>
    %c0_27 = arith.constant 0 : index
    %c0_28 = arith.constant 0 : index
    %41 = vector.load %arg12[%c0_27, %c0_28] : memref<128x3xbf16, #tpu.memory_space<vmem>>, vector<128x3xbf16>
    %cst_29 = arith.constant dense<0.000000e+00> : vector<64x3xf32>
    %42 = tpu.matmul %40, %41, %cst_29 {dimension_numbers = #tpu.dot_dimension_numbers<[1], [0], [0], [1], [0, 0, 1, 1], [], []>} : vector<64x128xbf16>, vector<128x3xbf16>, vector<64x3xf32> -> vector<64x3xf32>
    %c0_30 = arith.constant 0 : index
    %c0_31 = arith.constant 0 : index
    %43 = vector.load %arg13[%c0_30, %c0_31] : memref<1x3xf32, #tpu.memory_space<vmem>>, vector<1x3xf32>
    %44 = vector.broadcast %43 : vector<1x3xf32> to vector<64x3xf32>
    %45 = arith.addf %42, %44 : vector<64x3xf32>
    %cst_32 = arith.constant 0.000000e+00 : f32
    %46 = vector.broadcast %cst_32 : f32 to vector<64x3xf32>
    %47 = arith.subf %46, %45 : vector<64x3xf32>
    %48 = math.exp %47 : vector<64x3xf32>
    %cst_33 = arith.constant 1.000000e+00 : f32
    %49 = vector.broadcast %cst_33 : f32 to vector<64x3xf32>
    %50 = arith.addf %49, %48 : vector<64x3xf32>
    %51 = tpu.reciprocal %50 {approx = true} : vector<64x3xf32> -> vector<64x3xf32>
    %52 = vector.extract_strided_slice %29 {offsets = [0, 128], sizes = [64, 1], strides = [1, 1]} : vector<64x129xf32> to vector<64x1xf32>
    %53 = vector.shape_cast %52 : vector<64x1xf32> to vector<1x64xf32>
    %cst_34 = arith.constant 0.000000e+00 : f32
    %54 = vector.broadcast %cst_34 : f32 to vector<1x64xf32>
    %55 = arith.subf %54, %53 : vector<1x64xf32>
    %cst_35 = arith.constant 0.0634920672 : f32
    %56 = vector.broadcast %cst_35 : f32 to vector<1x64xf32>
    %57 = arith.mulf %55, %56 : vector<1x64xf32>
    %58 = math.exp %57 : vector<1x64xf32>
    %cst_36 = arith.constant 1.000000e+00 : f32
    %59 = vector.broadcast %cst_36 : f32 to vector<1x64xf32>
    %60 = arith.subf %59, %58 : vector<1x64xf32>
    %cst_37 = arith.constant 1.000000e-10 : f32
    %61 = vector.broadcast %cst_37 : f32 to vector<1x64xf32>
    %62 = arith.addf %58, %61 : vector<1x64xf32>
    %63 = math.log %62 : vector<1x64xf32>
    %64 = arith.truncf %63 : vector<1x64xf32> to vector<1x64xbf16>
    %65 = arith.extf %64 : vector<1x64xbf16> to vector<1x64xf32>
    %66 = arith.subf %63, %65 : vector<1x64xf32>
    %67 = arith.truncf %66 : vector<1x64xf32> to vector<1x64xbf16>
    %c0_38 = arith.constant 0 : index
    %c0_39 = arith.constant 0 : index
    %68 = vector.load %arg21[%c0_38, %c0_39] : memref<64x64xbf16, #tpu.memory_space<vmem>>, vector<64x64xbf16>
    %cst_40 = arith.constant dense<0.000000e+00> : vector<1x64xf32>
    %69 = tpu.matmul %64, %68, %cst_40 {dimension_numbers = #tpu.dot_dimension_numbers<[1], [0], [0], [1], [0, 0, 1, 1], [], []>} : vector<1x64xbf16>, vector<64x64xbf16>, vector<1x64xf32> -> vector<1x64xf32>
    %cst_41 = arith.constant dense<0.000000e+00> : vector<1x64xf32>
    %70 = tpu.matmul %67, %68, %cst_41 {dimension_numbers = #tpu.dot_dimension_numbers<[1], [0], [0], [1], [0, 0, 1, 1], [], []>} : vector<1x64xbf16>, vector<64x64xbf16>, vector<1x64xf32> -> vector<1x64xf32>
    %71 = arith.addf %69, %70 : vector<1x64xf32>
    %72 = math.exp %71 : vector<1x64xf32>
    %73 = arith.mulf %60, %72 : vector<1x64xf32>
    %c0_42 = arith.constant 0 : index
    %c0_43 = arith.constant 0 : index
    %74 = vector.load %arg22[%c0_42, %c0_43] : memref<1x64xf32, #tpu.memory_space<vmem>>, vector<1x64xf32>
    %75 = arith.mulf %73, %74 : vector<1x64xf32>
    %76 = vector.shape_cast %51 : vector<64x3xf32> to vector<1x64x3xf32>
    %77 = arith.truncf %75 : vector<1x64xf32> to vector<1x64xbf16>
    %78 = vector.shape_cast %77 : vector<1x64xbf16> to vector<1x1x64xbf16>
    %79 = arith.truncf %76 : vector<1x64x3xf32> to vector<1x64x3xbf16>
    %cst_44 = arith.constant dense<0.000000e+00> : vector<1x1x3xf32>
    %80 = tpu.matmul %78, %79, %cst_44 {dimension_numbers = #tpu.dot_dimension_numbers<[2], [1], [1], [2], [0, 0, 0, 1, 1, 2], [0], [0]>} : vector<1x1x64xbf16>, vector<1x64x3xbf16>, vector<1x1x3xf32> -> vector<1x1x3xf32>
    %81 = vector.shape_cast %80 : vector<1x1x3xf32> to vector<1x3xf32>
    %cst_45 = arith.constant dense<0.000000e+00> : vector<1xf32>
    %82 = vector.multi_reduction <add>, %81, %cst_45 [1] : vector<1x3xf32> to vector<1xf32>
    %83 = vector.shape_cast %82 : vector<1xf32> to vector<1x1xf32>
    %cst_46 = arith.constant 3.000000e+00 : f32
    %84 = vector.broadcast %cst_46 : f32 to vector<1x1xf32>
    %85 = arith.divf %83, %84 : vector<1x1xf32>
    %c0_47 = arith.constant 0 : index
    %c0_48 = arith.constant 0 : index
    %c0_49 = arith.constant 0 : index
    %86 = vector.load %arg2[%c0_47, %c0_48, %c0_49] : memref<1x1x14xbf16, #tpu.memory_space<vmem>>, vector<1x1x14xbf16>
    %87 = vector.shape_cast %86 : vector<1x1x14xbf16> to vector<1x14xbf16>
    %c0_50 = arith.constant 0 : index
    %c0_51 = arith.constant 0 : index
    %88 = vector.load %arg14[%c0_50, %c0_51] : memref<14x32xbf16, #tpu.memory_space<vmem>>, vector<14x32xbf16>
    %cst_52 = arith.constant dense<0.000000e+00> : vector<1x32xf32>
    %89 = tpu.matmul %87, %88, %cst_52 {dimension_numbers = #tpu.dot_dimension_numbers<[1], [0], [0], [1], [0, 0, 1, 1], [], []>} : vector<1x14xbf16>, vector<14x32xbf16>, vector<1x32xf32> -> vector<1x32xf32>
    %c0_53 = arith.constant 0 : index
    %c0_54 = arith.constant 0 : index
    %90 = vector.load %arg15[%c0_53, %c0_54] : memref<1x32xf32, #tpu.memory_space<vmem>>, vector<1x32xf32>
    %91 = arith.addf %89, %90 : vector<1x32xf32>
    %cst_55 = arith.constant 0.000000e+00 : f32
    %92 = vector.broadcast %cst_55 : f32 to vector<1x32xf32>
    %93 = arith.maximumf %91, %92 : vector<1x32xf32>
    %94 = arith.truncf %93 : vector<1x32xf32> to vector<1x32xbf16>
    %c0_56 = arith.constant 0 : index
    %c0_57 = arith.constant 0 : index
    %95 = vector.load %arg16[%c0_56, %c0_57] : memref<32x32xbf16, #tpu.memory_space<vmem>>, vector<32x32xbf16>
    %cst_58 = arith.constant dense<0.000000e+00> : vector<1x32xf32>
    %96 = tpu.matmul %94, %95, %cst_58 {dimension_numbers = #tpu.dot_dimension_numbers<[1], [0], [0], [1], [0, 0, 1, 1], [], []>} : vector<1x32xbf16>, vector<32x32xbf16>, vector<1x32xf32> -> vector<1x32xf32>
    %c0_59 = arith.constant 0 : index
    %c0_60 = arith.constant 0 : index
    %97 = vector.load %arg17[%c0_59, %c0_60] : memref<1x32xf32, #tpu.memory_space<vmem>>, vector<1x32xf32>
    %98 = arith.addf %96, %97 : vector<1x32xf32>
    %c0_61 = arith.constant 0 : index
    %c0_62 = arith.constant 0 : index
    %99 = vector.load %arg18[%c0_61, %c0_62] : memref<1x64xf32, #tpu.memory_space<vmem>>, vector<1x64xf32>
    %100 = vector.broadcast %85 : vector<1x1xf32> to vector<1x64xf32>
    %101 = arith.mulf %100, %99 : vector<1x64xf32>
    %102 = arith.truncf %98 : vector<1x32xf32> to vector<1x32xbf16>
    %c0_63 = arith.constant 0 : index
    %c0_64 = arith.constant 0 : index
    %103 = vector.load %arg19[%c0_63, %c0_64] : memref<32x64xbf16, #tpu.memory_space<vmem>>, vector<32x64xbf16>
    %cst_65 = arith.constant dense<0.000000e+00> : vector<1x64xf32>
    %104 = tpu.matmul %102, %103, %cst_65 {dimension_numbers = #tpu.dot_dimension_numbers<[1], [0], [0], [1], [0, 0, 1, 1], [], []>} : vector<1x32xbf16>, vector<32x64xbf16>, vector<1x64xf32> -> vector<1x64xf32>
    %105 = arith.addf %101, %104 : vector<1x64xf32>
    %c0_66 = arith.constant 0 : index
    %c0_67 = arith.constant 0 : index
    %106 = vector.load %arg20[%c0_66, %c0_67] : memref<1x64xf32, #tpu.memory_space<vmem>>, vector<1x64xf32>
    %107 = arith.addf %105, %106 : vector<1x64xf32>
    %c0_68 = arith.constant 0 : index
    %c0_69 = arith.constant 0 : index
    %c0_70 = arith.constant 0 : index
    %108 = vector.load %arg23[%c0_68, %c0_69, %c0_70] : memref<1x1x64xf32, #tpu.memory_space<vmem>>, vector<1x1x64xf32>
    %109 = vector.shape_cast %108 : vector<1x1x64xf32> to vector<1x64xf32>
    %110 = vector.shape_cast %107 : vector<1x64xf32> to vector<1x1x64xf32>
    tpu.vector_store %arg23[%c0_68, %c0_69, %c0_70], %110 {strides = array<i32>} : memref<1x1x64xf32, #tpu.memory_space<vmem>>, vector<1x1x64xf32>,
    return
  }
  func.func @transform_0(%arg0: i32) -> (i32, i32) {
    %c0_i32 = arith.constant 0 : i32
    %c0_i32_0 = arith.constant 0 : i32
    return %arg0, %c0_i32 : i32, i32
  }
  func.func @transform_1(%arg0: i32) -> (i32, i32, i32) {
    %c0_i32 = arith.constant 0 : i32
    %c0_i32_0 = arith.constant 0 : i32
    %c0_i32_1 = arith.constant 0 : i32
    return %arg0, %c0_i32, %c0_i32_0 : i32, i32, i32
  }
  func.func @transform_2(%arg0: i32) -> (i32, i32, i32) {
    %c0_i32 = arith.constant 0 : i32
    %c0_i32_0 = arith.constant 0 : i32
    %c0_i32_1 = arith.constant 0 : i32
    return %arg0, %c0_i32, %c0_i32_0 : i32, i32, i32
  }
  func.func @transform_3(%arg0: i32) -> (i32, i32) {
    %c0_i32 = arith.constant 0 : i32
    %c0_i32_0 = arith.constant 0 : i32
    %c0_i32_1 = arith.constant 0 : i32
    return %c0_i32, %c0_i32_0 : i32, i32
  }
  func.func @transform_4(%arg0: i32) -> (i32, i32) {
    %c0_i32 = arith.constant 0 : i32
    %c0_i32_0 = arith.constant 0 : i32
    %c0_i32_1 = arith.constant 0 : i32
    return %c0_i32, %c0_i32_0 : i32, i32
  }
  func.func @transform_5(%arg0: i32) -> (i32, i32) {
    %c0_i32 = arith.constant 0 : i32
    %c0_i32_0 = arith.constant 0 : i32
    %c0_i32_1 = arith.constant 0 : i32
    return %c0_i32, %c0_i32_0 : i32, i32
  }
  func.func @transform_6(%arg0: i32) -> (i32, i32) {
    %c0_i32 = arith.constant 0 : i32
    %c0_i32_0 = arith.constant 0 : i32
    %c0_i32_1 = arith.constant 0 : i32
    return %c0_i32, %c0_i32_0 : i32, i32
  }
  func.func @transform_7(%arg0: i32) -> (i32, i32) {
    %c0_i32 = arith.constant 0 : i32
    %c0_i32_0 = arith.constant 0 : i32
    %c0_i32_1 = arith.constant 0 : i32
    return %c0_i32, %c0_i32_0 : i32, i32
  }
  func.func @transform_8(%arg0: i32) -> (i32, i32) {
    %c0_i32 = arith.constant 0 : i32
    %c0_i32_0 = arith.constant 0 : i32
    %c0_i32_1 = arith.constant 0 : i32
    return %c0_i32, %c0_i32_0 : i32, i32
  }
  func.func @transform_9(%arg0: i32) -> (i32, i32) {
    %c0_i32 = arith.constant 0 : i32
    %c0_i32_0 = arith.constant 0 : i32
    %c0_i32_1 = arith.constant 0 : i32
    return %c0_i32, %c0_i32_0 : i32, i32
  }
  func.func @transform_10(%arg0: i32) -> (i32, i32) {
    %c0_i32 = arith.constant 0 : i32
    %c0_i32_0 = arith.constant 0 : i32
    %c0_i32_1 = arith.constant 0 : i32
    return %c0_i32, %c0_i32_0 : i32, i32
  }
  func.func @transform_11(%arg0: i32) -> (i32, i32) {
    %c0_i32 = arith.constant 0 : i32
    %c0_i32_0 = arith.constant 0 : i32
    %c0_i32_1 = arith.constant 0 : i32
    return %c0_i32, %c0_i32_0 : i32, i32
  }
  func.func @transform_12(%arg0: i32) -> (i32, i32) {
    %c0_i32 = arith.constant 0 : i32
    %c0_i32_0 = arith.constant 0 : i32
    %c0_i32_1 = arith.constant 0 : i32
    return %c0_i32, %c0_i32_0 : i32, i32
  }
  func.func @transform_13(%arg0: i32) -> (i32, i32) {
    %c0_i32 = arith.constant 0 : i32
    %c0_i32_0 = arith.constant 0 : i32
    %c0_i32_1 = arith.constant 0 : i32
    return %c0_i32, %c0_i32_0 : i32, i32
  }
  func.func @transform_14(%arg0: i32) -> (i32, i32) {
    %c0_i32 = arith.constant 0 : i32
    %c0_i32_0 = arith.constant 0 : i32
    %c0_i32_1 = arith.constant 0 : i32
    return %c0_i32, %c0_i32_0 : i32, i32
  }
  func.func @transform_15(%arg0: i32) -> (i32, i32) {
    %c0_i32 = arith.constant 0 : i32
    %c0_i32_0 = arith.constant 0 : i32
    %c0_i32_1 = arith.constant 0 : i32
    return %c0_i32, %c0_i32_0 : i32, i32
  }
  func.func @transform_16(%arg0: i32) -> (i32, i32) {
    %c0_i32 = arith.constant 0 : i32
    %c0_i32_0 = arith.constant 0 : i32
    %c0_i32_1 = arith.constant 0 : i32
    return %c0_i32, %c0_i32_0 : i32, i32
  }
  func.func @transform_17(%arg0: i32) -> (i32, i32) {
    %c0_i32 = arith.constant 0 : i32
    %c0_i32_0 = arith.constant 0 : i32
    %c0_i32_1 = arith.constant 0 : i32
    return %c0_i32, %c0_i32_0 : i32, i32
  }
  func.func @transform_18(%arg0: i32) -> (i32, i32) {
    %c0_i32 = arith.constant 0 : i32
    %c0_i32_0 = arith.constant 0 : i32
    %c0_i32_1 = arith.constant 0 : i32
    return %c0_i32, %c0_i32_0 : i32, i32
  }
  func.func @transform_19(%arg0: i32) -> (i32, i32) {
    %c0_i32 = arith.constant 0 : i32
    %c0_i32_0 = arith.constant 0 : i32
    %c0_i32_1 = arith.constant 0 : i32
    return %c0_i32, %c0_i32_0 : i32, i32
  }
  func.func @transform_20(%arg0: i32) -> (i32, i32) {
    %c0_i32 = arith.constant 0 : i32
    %c0_i32_0 = arith.constant 0 : i32
    %c0_i32_1 = arith.constant 0 : i32
    return %c0_i32, %c0_i32_0 : i32, i32
  }
  func.func @transform_21(%arg0: i32) -> (i32, i32) {
    %c0_i32 = arith.constant 0 : i32
    %c0_i32_0 = arith.constant 0 : i32
    %c0_i32_1 = arith.constant 0 : i32
    return %c0_i32, %c0_i32_0 : i32, i32
  }
  func.func @transform_22(%arg0: i32) -> (i32, i32, i32) {
    %c0_i32 = arith.constant 0 : i32
    %c0_i32_0 = arith.constant 0 : i32
    %c0_i32_1 = arith.constant 0 : i32
    return %arg0, %c0_i32, %c0_i32_0 : i32, i32, i32
  }
}

</mosaic_0001>

<bundles_post_ra>
// kernel: _fr3_forward.1
= control target key start
LH: loop header
LB: loop body
LE: loop exit
PB: predicated region body
PF: predicated region fallthrough
CT: control target
= control target key end

     0   :  { %s4939_s0 = inlined_call_operand.vmem [shape: bf16[128,128], index: 0, kind: input, shape index: {}]   ;;  %s4940_s1 = inlined_call_operand.vmem [shape: bf16[2,1,14], index: 1, kind: input, shape index: {}]   ;;  %s4941_s2 = inlined_call_operand.vmem [shape: f32[2,1,128], index: 2, kind: input, shape index: {}]   ;;  %s4942_s3 = inlined_call_operand.vmem [shape: bf16[128,256], index: 3, kind: input, shape index: {}]   ;;  %s4943_s4 = inlined_call_operand.vmem [shape: f32[1,256], index: 4, kind: input, shape index: {}]   ;;  %s4944_s5 = inlined_call_operand.vmem [shape: bf16[256,256], index: 5, kind: input, shape index: {}]   ;;  %s4945_s6 = inlined_call_operand.vmem [shape: f32[1,256], index: 6, kind: input, shape index: {}]   ;;  %s4946_s7 = inlined_call_operand.vmem [shape: bf16[256,256], index: 7, kind: input, shape index: {}]   ;;  %s4947_s8 = inlined_call_operand.vmem [shape: f32[1,256], index: 8, kind: input, shape index: {}]   ;;  %s4948_s9 = inlined_call_operand.vmem [shape: bf16[256,129], index: 9, kind: input, shape index: {}]   ;;  %s4949_s10 = inlined_call_operand.vmem [shape: f32[1,129], index: 10, kind: input, shape index: {}]   ;;  %s4950_s11 = inlined_call_operand.vmem [shape: bf16[128,3], index: 11, kind: input, shape index: {}]   ;;  %s4951_s12 = inlined_call_operand.vmem [shape: f32[1,3], index: 12, kind: input, shape index: {}]   ;;  %s4952_s13 = inlined_call_operand.vmem [shape: bf16[14,32], index: 13, kind: input, shape index: {}]   ;;  %s4953_s14 = inlined_call_operand.vmem [shape: f32[1,32], index: 14, kind: input, shape index: {}]   ;;  %s4954_s15 = inlined_call_operand.vmem [shape: bf16[32,32], index: 15, kind: input, shape index: {}]   ;;  %s4955_s16 = inlined_call_operand.vmem [shape: f32[1,32], index: 16, kind: input, shape index: {}]   ;;  %s4956_s17 = inlined_call_operand.vmem [shape: f32[1,64], index: 17, kind: input, shape index: {}]   ;;  %s4957_s18 = inlined_call_operand.vmem [shape: bf16[32,64], index: 18, kind: input, shape index: {}]   ;;  %s4958_s19 = inlined_call_operand.vmem [shape: f32[1,64], index: 19, kind: input, shape index: {}]   ;;  %s4959_s20 = inlined_call_operand.vmem [shape: bf16[64,64], index: 20, kind: input, shape index: {}]   ;;  %s4960_s21 = inlined_call_operand.vmem [shape: f32[1,64], index: 21, kind: input, shape index: {}]   ;;  %s4961_s22 = inlined_call_operand.hbm [shape: f32[2,1,64], index: 22, kind: output, shape index: {}]  }
   0x1   :  { %4974 = sst [smem:[#allocation12_spill]] %s4939_s0 }
   0x2   :  { %4975 = sst [smem:[#allocation13_spill]] %s4940_s1 }
   0x3   :  { %4976 = sst [smem:[#allocation14_spill]] %s4941_s2 }
   0x4   :  { %4977 = sst [smem:[#allocation15_spill]] %s4942_s3 }
   0x5   :  { %4978 = sst [smem:[#allocation16_spill]] %s4943_s4 }
   0x6   :  { %4979 = sst [smem:[#allocation17_spill]] %s4944_s5 }
   0x7   :  { %4980 = sst [smem:[#allocation18_spill]] %s4945_s6 }
   0x8   :  { %4981 = sst [smem:[#allocation19_spill]] %s4946_s7 }
   0x9   :  { %4982 = sst [smem:[#allocation20_spill]] %s4947_s8 }
   0xa   :  { %4983 = sst [smem:[#allocation21_spill]] %s4958_s19 }
   0xb   :  { %27 = vsyncpa [#allocation3], 0 }
   0xc   :  { %29 = vsyncpa [#allocation3 + $0x1], 0  ;;  %s3843_s3 = smov 0   ;;  %s3845_s28 = smov 0  }
   0xd   :  { %s3847_s29 = smov 0   ;;  %s3849_s30 = smov 0  }
   0xe LB: > { %4984 = sst [smem:[#allocation5_spill]] %s3712_s3  ;;  %s3864_s4 = sadd.s32 4294967295, %s3724_s30   ;;  %s3724_s30 = sphi %s3849_s30, %s5008_s30   ;;  %s3720_s29 = sphi %s3847_s29, %s5010_s29   ;;  %s3716_s28 = sphi %s3845_s28, %s5012_s28   ;;  %s3712_s3 = sphi %s3843_s3, %s5011_s3  }
   0xf   : > { %4985 = sst [smem:[#allocation6_spill]] %s3720_s29  ;;  %s2835_s0 = sadd.s32 4294967294, %s3724_s30  }
  0x10   : > { %4986 = sst [smem:[#allocation7_spill]] %s3724_s30  ;;  %s3868_s23 = sadd.s32 1, %s3724_s30  }
  0x11   : > { %4987 = sst [smem:[#allocation8_spill]] %s3868_s23  ;;  %s519_s1 = sadd.s32 1, %s3720_s29 }
  0x12   : > { %s516_s5 = ssub.s32 %s3724_s30, %s3868_s23  ;;  %p529_p0 = scmp.ne.s32.totalorder %s3720_s29, %s3716_s28 }
  0x13   : > { %p517_p1 = scmp.eq.s32.totalorder %s516_s5, 0  ;;  %p530_p2 = scmp.eq.s32.totalorder %s3864_s4, 1 }
  0x14   : > { %p535_p3 = scmp.ne.s32.totalorder %s3716_s28, %s3712_s3  ;;  %p536_p4 = scmp.eq.s32.totalorder %s2835_s0, 1 }
  0x15   : > { %s3879_s24 = scalar_select %p517_p1, %s3720_s29, %s519_s1  }
  0x16   : > { %p3881_p5 = por %p530_p2, %p529_p0  ;;  %p3885_p6 = por %p536_p4, %p535_p3 }
  0x17   : > { %4988 = sst [smem:[#allocation9_spill]] %s3879_s24  ;;  %p2838_p7 = scmp.ge.s32.totalorder %s3724_s30, 1 }
  0x18   : > { %s4989_s6 = scalar_select %p3881_p5, 1, 0 }
  0x19   : > { %s4991_s25 = scalar_select %p3885_p6, 1, 0 }
  0x1a   : > { %4990 = sst [smem:[#allocation10_spill]] %s4989_s6  ;;  %p632_p8 = scmp.lt.s32.totalorder %s3724_s30, 3 }
  0x1b   : > { %4992 = sst [smem:[#allocation11_spill]] %s4991_s25 }
  0x1c   : > { %p633_p9 = pnand %p2838_p7, %p632_p8 }
  0x1d   : > { %s4993_s27 = sld [smem:[#allocation15_spill]] (!%p633_p9)  ;;  %s2839_s23 = sshll.u32 (!%p633_p9), %s3864_s4, 3 }
  0x1e   : > { %636 = sbr.rel (%p633_p9) target bundleno = 1725 (0x6bd), region = 108  ;;  %p700_p10 = scmp.lt.s32.totalorder (!%p633_p9), %s2839_s23, 15 }
  0x1f   : > { %s4994_s19 = sld [smem:[#allocation12_spill]] (!%p633_p9)  ;;  %p705_p11 = scmp.lt.s32.totalorder (!%p633_p9), %s3864_s4, 1 }
  0x20   : > { %s4995_s29 = sld [smem:[#allocation17_spill]] (!%p633_p9)  ;;  %s697_s2 = sand.u32 (!%p633_p9), 1, %s3716_s28  }
  0x21   : > { %s4997_s1 = sld [smem:[#allocation16_spill]] (!%p633_p9)  ;;  %s2758_s3 = scalar_lea.hbm (!%p633_p9), %s4961_s22, %s3864_s4 }
  0x22   : > { %s4998_s7 = sld [smem:[#allocation19_spill]] (!%p633_p9)  ;;  %s2750_s5 = scalar_lea.sflag (!%p633_p9), [#allocation3], %s697_s2 }
  0x23   : > { %v2915_v0 = vld [vmem:[%s4993_s27 + $0x70] sm:$0xf]  ;;  %v3416_v1 = vld [vmem:[%s4993_s27 + $0x74] sm:$0xf0]  ;;  %v3415_v2 = vld [vmem:[%s4993_s27 + $0x74] sm:$0xf] }
  0x24   : > { %v2916_v3 = vor.u32 %v3416_v1, %v2915_v0  ;;  %v2917_v4 = vld [vmem:[%s4993_s27 + $0x78] sm:$0xf0]  ;;  %v2907_v5 = vld [vmem:[%s4993_s27 + $0x60] sm:$0xf]  ;;  %v3414_v6 = vld [vmem:[%s4993_s27 + $0x64] sm:$0xf0] }
  0x25   : > { %v2920_v7 = vor.u32 %v3415_v2, %v2917_v4  ;;  %v3413_v8 = vld [vmem:[%s4993_s27 + $0x64] sm:$0xf]  ;;  %v2909_v9 = vld [vmem:[%s4993_s27 + $0x68] sm:$0xf0]  ;;  %v2908_v10 = vor.u32 %v3414_v6, %v2907_v5  ;;  %v2899_v12 = vld [vmem:[%s4993_s27 + $0x50] sm:$0xf] }
  0x26   : > { %846 = vmatpush.bf16.msra.mxu0 %v2916_v3  ;;  %v2912_v11 = vor.u32 %v3413_v8, %v2909_v9  ;;  %v3412_v13 = vld [vmem:[%s4993_s27 + $0x54] sm:$0xf0]  ;;  %v3411_v14 = vld [vmem:[%s4993_s27 + $0x54] sm:$0xf]  ;;  %v2901_v15 = vld [vmem:[%s4993_s27 + $0x58] sm:$0xf0]  ;;  %s4996_s25 = smov %s4995_s29 }
  0x27   : > { %875 = vmatpush.bf16.msra.mxu1 %v2920_v7  ;;  %v2900_v16 = vor.u32 %v3412_v13, %v2899_v12  ;;  %v2904_v17 = vor.u32 %v3411_v14, %v2901_v15  ;;  %v2891_v18 = vld [vmem:[%s4993_s27 + $0x40] sm:$0xf]  ;;  %v3410_v19 = vld [vmem:[%s4993_s27 + $0x44] sm:$0xf0]  ;;  %v3409_v20 = vld [vmem:[%s4993_s27 + $0x44] sm:$0xf] }
  0x28   : > { %v2893_v21 = vld [vmem:[%s4993_s27 + $0x48] sm:$0xf0]  ;;  %v2892_v22 = vor.u32 %v3410_v19, %v2891_v18  ;;  %v2883_v24 = vld [vmem:[%s4993_s27 + $0x30] sm:$0xf]  ;;  %v3408_v25 = vld [vmem:[%s4993_s27 + $0x34] sm:$0xf0] }
  0x29   : > { %v2896_v23 = vor.u32 %v3409_v20, %v2893_v21  ;;  %v3407_v26 = vld [vmem:[%s4993_s27 + $0x34] sm:$0xf]  ;;  %v2885_v27 = vld [vmem:[%s4993_s27 + $0x38] sm:$0xf0]  ;;  %v2884_v28 = vor.u32 %v3408_v25, %v2883_v24  ;;  %v2875_v30 = vld [vmem:[%s4993_s27 + $0x20] sm:$0xf] }
  0x2a   : > { %847 = vmatpush.bf16.msra.mxu0 %v2908_v10  ;;  %v2888_v29 = vor.u32 %v3407_v26, %v2885_v27  ;;  %v3406_v31 = vld [vmem:[%s4993_s27 + $0x24] sm:$0xf0]  ;;  %v3405_v32 = vld [vmem:[%s4993_s27 + $0x24] sm:$0xf]  ;;  %v2877_v33 = vld [vmem:[%s4993_s27 + $0x28] sm:$0xf0] }
  0x2b   : > { %876 = vmatpush.bf16.msra.mxu1 %v2912_v11  ;;  %v2876_v34 = vor.u32 %v3406_v31, %v2875_v30  ;;  %v2880_v35 = vor.u32 %v3405_v32, %v2877_v33  ;;  %v2867_v36 = vld [vmem:[%s4993_s27 + $0x10] sm:$0xf]  ;;  %v3404_v37 = vld [vmem:[%s4993_s27 + $0x14] sm:$0xf0]  ;;  %s5014_s23 = smov (!%p700_p10, %s2839_s23), 15  ;;  %s4999_s26 = sld [smem:[#allocation18_spill]] }
  0x2c   : > { %v3403_v38 = vld [vmem:[%s4993_s27 + $0x14] sm:$0xf]  ;;  %v2869_v39 = vld [vmem:[%s4993_s27 + $0x18] sm:$0xf0]  ;;  %v2868_v40 = vor.u32 %v3404_v37, %v2867_v36  ;;  %v2859_v42 = vld [vmem:[%s4993_s27] sm:$0xf] }
  0x2d   : > { %v2872_v41 = vor.u32 %v3403_v38, %v2869_v39  ;;  %v3402_v43 = vld [vmem:[%s4993_s27 + $0x4] sm:$0xf0]  ;;  %s2840_s30 = sshll.u32 %s5014_s23, 2  ;;  %v3401_v44 = vld [vmem:[%s4993_s27 + $0x4] sm:$0xf]  ;;  %s5000_s8 = sld [smem:[#allocation20_spill]] }
  0x2e   : > { %848 = vmatpush.bf16.msra.mxu0 %v2900_v16  ;;  %v2861_v45 = vld [vmem:[%s4993_s27 + $0x8] sm:$0xf0]  ;;  %v2860_v46 = vor.u32 %v3402_v43, %v2859_v42  ;;  %s3991_s24 = scalar_lea.vmem %s4994_s19, %s2840_s30  ;;  %v3431_v50 = vld [vmem:[%s4995_s29 + $0x74] sm:$0xf]  ;;  %v2981_v51 = vld [vmem:[%s4996_s25 + $0x78] sm:$0xf0] }
  0x2f   : > { %877 = vmatpush.bf16.msra.mxu1 %v2904_v17  ;;  %v2864_v47 = vor.u32 %v3401_v44, %v2861_v45  ;;  %v3397_v48 = vld [vmem:[%s3991_s24] sm:$0xff]  ;;  %v3398_v49 = vld [vmem:[%s3991_s24 + $0x8] sm:$0xff]  ;;  %v3447_v52 = vld [vmem:[%s4996_s25 + $0xf4] sm:$0xf]  ;;  %v2984_v53 = vor.u32 %v3431_v50, %v2981_v51  ;;  %s4635_s27 = scalar_select %p705_p11, %s3864_s4, 1  ;;  %vm2220_vm0 = vcmask 130112  }
  0x30   : > { %v3045_v54 = vld [vmem:[%s4996_s25 + $0xf8] sm:$0xf0]  ;;  %v3429_v55 = vld [vmem:[%s4996_s25 + $0x64] sm:$0xf]  ;;  %v2973_v56 = vld [vmem:[%s4996_s25 + $0x68] sm:$0xf0] }
  0x31   : > { %v3048_v57 = vor.u32 %v3447_v52, %v3045_v54  ;;  %v3445_v58 = vld [vmem:[%s4996_s25 + $0xe4] sm:$0xf]  ;;  %v3037_v59 = vld [vmem:[%s4996_s25 + $0xe8] sm:$0xf0]  ;;  %v2976_v60 = vor.u32 %v3429_v55, %v2973_v56  ;;  %v3427_v61 = vld [vmem:[%s4996_s25 + $0x54] sm:$0xf] }
  0x32   : > { %849 = vmatpush.bf16.msra.mxu0 %v2892_v22  ;;  %v2965_v62 = vld [vmem:[%s4996_s25 + $0x58] sm:$0xf0]  ;;  %v3040_v63 = vor.u32 %v3445_v58, %v3037_v59  ;;  %v3443_v0 = vld [vmem:[%s4996_s25 + $0xd4] sm:$0xf]  ;;  %v2979_v2 = vld [vmem:[%s4996_s25 + $0x70] sm:$0xf] }
  0x33   : > { %878 = vmatpush.bf16.msra.mxu1 %v2896_v23  ;;  %v3029_v1 = vld [vmem:[%s4996_s25 + $0xd8] sm:$0xf0]  ;;  %v3432_v3 = vld [vmem:[%s4996_s25 + $0x74] sm:$0xf0]  ;;  %v3043_v4 = vld [vmem:[%s4996_s25 + $0xf0] sm:$0xf]  ;;  %v2968_v9 = vor.u32 %v3427_v61, %v2965_v62 }
  0x34   : > { %v3448_v5 = vld [vmem:[%s4996_s25 + $0xf4] sm:$0xf0]  ;;  %v2980_v6 = vor.u32 %v3432_v3, %v2979_v2  ;;  %v2971_v8 = vld [vmem:[%s4996_s25 + $0x60] sm:$0xf]  ;;  %v3430_v10 = vld [vmem:[%s4996_s25 + $0x64] sm:$0xf0]  ;;  %v3032_v13 = vor.u32 %v3443_v0, %v3029_v1 }
  0x35   : > { %v3044_v7 = vor.u32 %v3448_v5, %v3043_v4  ;;  %v3035_v11 = vld [vmem:[%s4996_s25 + $0xe0] sm:$0xf]  ;;  %v3446_v12 = vld [vmem:[%s4996_s25 + $0xe4] sm:$0xf0]  ;;  %v2972_v14 = vor.u32 %v3430_v10, %v2971_v8  ;;  %v3425_v15 = vld [vmem:[%s4996_s25 + $0x44] sm:$0xf] }
  0x36   : > { %850 = vmatpush.bf16.msra.mxu0 %v2884_v28  ;;  %1126 = vmatpush.bf16.msra.mxu2 %v2980_v6  ;;  %v2957_v16 = vld [vmem:[%s4996_s25 + $0x48] sm:$0xf0]  ;;  %v3441_v17 = vld [vmem:[%s4996_s25 + $0xc4] sm:$0xf]  ;;  %v3036_v18 = vor.u32 %v3446_v12, %v3035_v11  ;;  %v2963_v20 = vld [vmem:[%s4996_s25 + $0x50] sm:$0xf] }
  0x37   : > { %879 = vmatpush.bf16.msra.mxu1 %v2888_v29  ;;  %1155 = vmatpush.bf16.msra.mxu3 %v3044_v7  ;;  %v3021_v19 = vld [vmem:[%s4996_s25 + $0xc8] sm:$0xf0]  ;;  %v3428_v21 = vld [vmem:[%s4996_s25 + $0x54] sm:$0xf0]  ;;  %v3399_v22 = vld [vmem:[%s3991_s24 + $0x10] sm:$0xff]  ;;  %v2960_v25 = vor.u32 %v3425_v15, %v2957_v16  ;;  %s5001_s23 = sld [smem:[#allocation14_spill]] }
  0x38   : > { %v3027_v23 = vld [vmem:[%s4996_s25 + $0xd0] sm:$0xf]  ;;  %v3444_v24 = vld [vmem:[%s4996_s25 + $0xd4] sm:$0xf0]  ;;  %v3024_v26 = vor.u32 %v3441_v17, %v3021_v19  ;;  %v3423_v27 = vld [vmem:[%s4996_s25 + $0x34] sm:$0xf]  ;;  %v2964_v29 = vor.u32 %v3428_v21, %v2963_v20 }
  0x39   : > { %v2949_v28 = vld [vmem:[%s4996_s25 + $0x38] sm:$0xf0]  ;;  %v3439_v30 = vld [vmem:[%s4996_s25 + $0xb4] sm:$0xf]  ;;  %v3028_v31 = vor.u32 %v3444_v24, %v3027_v23  ;;  %v2955_v33 = vld [vmem:[%s4996_s25 + $0x40] sm:$0xf] }
  0x3a   : > { %851 = vmatpush.bf16.msra.mxu0 %v2876_v34  ;;  %1127 = vmatpush.bf16.msra.mxu2 %v2972_v14  ;;  %v3013_v32 = vld [vmem:[%s4996_s25 + $0xb8] sm:$0xf0]  ;;  %v3426_v34 = vld [vmem:[%s4996_s25 + $0x44] sm:$0xf0]  ;;  %v2952_v37 = vor.u32 %v3423_v27, %v2949_v28  ;;  %v2947_v45 = vld [vmem:[%s4996_s25 + $0x30] sm:$0xf] }
  0x3b   : > { %880 = vmatpush.bf16.msra.mxu1 %v2880_v35  ;;  %1156 = vmatpush.bf16.msra.mxu3 %v3036_v18  ;;  %v3019_v35 = vld [vmem:[%s4996_s25 + $0xc0] sm:$0xf]  ;;  %v3442_v36 = vld [vmem:[%s4996_s25 + $0xc4] sm:$0xf0]  ;;  %v3016_v38 = vor.u32 %v3439_v30, %v3013_v32  ;;  %v2956_v39 = vor.u32 %v3426_v34, %v2955_v33  ;;  %v3400_v44 = vld [vmem:[%s3991_s24 + $0x18] sm:$0xff]  ;;  %vm2224_vm1 = vcmask 195712  }
  0x3c   : > { %v3020_v42 = vor.u32 %v3442_v36, %v3019_v35  ;;  %v3437_v51 = vld [vmem:[%s4996_s25 + $0xa4] sm:$0xf]  ;;  %v3005_v52 = vld [vmem:[%s4996_s25 + $0xa8] sm:$0xf0]  ;;  %v2939_v54 = vld [vmem:[%s4996_s25 + $0x20] sm:$0xf] }
  0x3d   : > { %v3422_v55 = vld [vmem:[%s4996_s25 + $0x24] sm:$0xf0]  ;;  %v3003_v56 = vld [vmem:[%s4996_s25 + $0xa0] sm:$0xf]  ;;  %v3419_v59 = vld [vmem:[%s4996_s25 + $0x14] sm:$0xf]  ;;  %s710_s24 = scalar_lea.vmem %s5001_s23, %s4635_s27 }
  0x3e   : > { %852 = vmatpush.bf16.msra.mxu0 %v2868_v40  ;;  %1128 = vmatpush.bf16.msra.mxu2 %v2964_v29  ;;  %v3421_v40 = vld [vmem:[%s4996_s25 + $0x24] sm:$0xf]  ;;  %v3438_v58 = vld [vmem:[%s4996_s25 + $0xa4] sm:$0xf0]  ;;  %v3420_v0 = vld [vmem:[%s4996_s25 + $0x14] sm:$0xf0] }
  0x3f   : > { %881 = vmatpush.bf16.msra.mxu1 %v2872_v41  ;;  %v2941_v41 = vld [vmem:[%s4996_s25 + $0x28] sm:$0xf0]  ;;  %1157 = vmatpush.bf16.msra.mxu3 %v3028_v31  ;;  %v3004_v61 = vor.u32 %v3438_v58, %v3003_v56  ;;  %v2995_v1 = vld [vmem:[%s4996_s25 + $0x90] sm:$0xf]  ;;  %v3436_v3 = vld [vmem:[%s4996_s25 + $0x94] sm:$0xf0] }
  0x40   : > { %v2944_v43 = vor.u32 %v3421_v40, %v2941_v41  ;;  %v3435_v4 = vld [vmem:[%s4996_s25 + $0x94] sm:$0xf]  ;;  %v2997_v5 = vld [vmem:[%s4996_s25 + $0x98] sm:$0xf0]  ;;  %v2996_v6 = vor.u32 %v3436_v3, %v2995_v1  ;;  %v2923_v8 = vld [vmem:[%s4996_s25] sm:$0xf] }
  0x41   : > { %v3000_v7 = vor.u32 %v3435_v4, %v2997_v5  ;;  %v2987_v10 = vld [vmem:[%s4996_s25 + $0x80] sm:$0xf]  ;;  %v3434_v12 = vld [vmem:[%s4996_s25 + $0x84] sm:$0xf0]  ;;  %v2925_v14 = vld [vmem:[%s4996_s25 + $0x8] sm:$0xf0] }
  0x42   : > { %853 = vmatpush.bf16.msra.mxu0 %v2860_v46  ;;  %1129 = vmatpush.bf16.msra.mxu2 %v2956_v39  ;;  %v3424_v46 = vld [vmem:[%s4996_s25 + $0x34] sm:$0xf0]  ;;  %v2988_v15 = vor.u32 %v3434_v12, %v2987_v10  ;;  %v3433_v17 = vld [vmem:[%s4996_s25 + $0x84] sm:$0xf]  ;;  %v2989_v18 = vld [vmem:[%s4996_s25 + $0x88] sm:$0xf0] }
  0x43   : > { %882 = vmatpush.bf16.msra.mxu1 %v2864_v47  ;;  %1158 = vmatpush.bf16.msra.mxu3 %v3020_v42  ;;  %v3011_v47 = vld [vmem:[%s4996_s25 + $0xb0] sm:$0xf]  ;;  %v2992_v19 = vor.u32 %v3433_v17, %v2989_v18  ;;  %v736_v20 = vld [vmem:[%s4997_s1] sm:$0x3]  ;;  %v3479_v3 = vld [vmem:[%s4998_s7 + $0xf4] sm:$0xf] }
  0x44   : > { %v4192_v23 = vperm.slane %v736_v20, 0  ;;  %v4194_v24 = vperm.slane %v736_v20, 1  ;;  %v3099_v58 = vld [vmem:[%s4998_s7 + $0x60] sm:$0xf]  ;;  %v3173_v5 = vld [vmem:[%s4998_s7 + $0xf8] sm:$0xf0] }
  0x45   : > { %854 = vmatmul.bf16.vlgmr.msra.gmra.mxu0 %v3397_v48  ;;  %v3101_v10 = vld [vmem:[%s4998_s7 + $0x68] sm:$0xf0]  ;;  %v3155_v12 = vld [vmem:[%s4998_s7 + $0xd0] sm:$0xf]  ;;  %vm2228_vm2 = vcmask 261312   ;;  %vm2232_vm3 = vcmask 326912  }
  0x46   : > { %883 = vmatmul.bf16.vlgmr.msra.gmra.mxu1 %v3397_v48  ;;  %1184 = vmatpush.bf16.msrb.mxu0 %v2984_v53  ;;  %v2948_v48 = vor.u32 %v3424_v46, %v2947_v45  ;;  %v3008_v53 = vor.u32 %v3437_v51, %v3005_v52  ;;  %v3107_v52 = vld [vmem:[%s4998_s7 + $0x70] sm:$0xf]  ;;  %v3165_v17 = vld [vmem:[%s4998_s7 + $0xe8] sm:$0xf0]  ;;  %vm2236_vm4 = vcmask 392512   ;;  %vm2240_vm5 = vcmask 458112  }
  0x47   : > { %1213 = vmatpush.bf16.msrb.mxu1 %v3048_v57  ;;  %v2940_v57 = vor.u32 %v3422_v55, %v2939_v54  ;;  %v3171_v54 = vld [vmem:[%s4998_s7 + $0xf0] sm:$0xf]  ;;  %vm2244_vm6 = vcmask 523712   ;;  %vm2271_vm7 = vcmask 523264   ;;  %vm2656_vm8 = vcmask 1046528   ;;  %s698_s1 = scalar_lea.vmem [#allocation2], %s697_s2 }
  0x48   : > { %1130 = vmatpush.bf16.msra.mxu2 %v2948_v48  ;;  %vm2652_vm9 = vcmask 113664   ;;  %vm2631_vm10 = vcmask 16384   ;;  %vm2692_vm11 = vcmask 261120   ;;  %vm2747_vm13 = vcmask 516096   ;;  %s3682_s6 = scalar_lea.hbm %s4961_s22, 2 }
  0x4a   : > { %1185 = vmatpush.bf16.msrb.mxu0 %v2976_v60  ;;  %v2933_v60 = vld [vmem:[%s4996_s25 + $0x18] sm:$0xf0] }
  0x4b   : > { %1214 = vmatpush.bf16.msrb.mxu1 %v3040_v63  ;;  %v2936_v62 = vor.u32 %v3419_v59, %v2933_v60  ;;  %v2931_v63 = vld [vmem:[%s4996_s25 + $0x10] sm:$0xf]  ;;  %v3462_v59 = vld [vmem:[%s4998_s7 + $0x64] sm:$0xf0] }
  0x4c   : > { %1131 = vmatpush.bf16.msra.mxu2 %v2940_v57  ;;  %v2932_v2 = vor.u32 %v3420_v0, %v2931_v63  ;;  %v3480_v57 = vld [vmem:[%s4998_s7 + $0xf4] sm:$0xf0]  ;;  %v3163_v63 = vld [vmem:[%s4998_s7 + $0xe0] sm:$0xf]  ;;  %v3100_v0 = vor.u32 %v3462_v59, %v3099_v58 }
  0x4d   : > { %v3172_v60 = vor.u32 %v3480_v57, %v3171_v54  ;;  %v3455_v54 = vld [vmem:[%s4998_s7 + $0x34] sm:$0xf] }
  0x4e   : > { %1186 = vmatpush.bf16.msrb.mxu0 %v2968_v9  ;;  %v3418_v9 = vld [vmem:[%s4996_s25 + $0x4] sm:$0xf0] }
  0x4f   : > { %1215 = vmatpush.bf16.msrb.mxu1 %v3032_v13  ;;  %v2924_v11 = vor.u32 %v3418_v9, %v2923_v8  ;;  %v3417_v13 = vld [vmem:[%s4996_s25 + $0x4] sm:$0xf]  ;;  %v3460_v8 = vld [vmem:[%s4998_s7 + $0x54] sm:$0xf0] }
  0x50   : > { %1132 = vmatpush.bf16.msra.mxu2 %v2932_v2  ;;  %v2928_v16 = vor.u32 %v3417_v13, %v2925_v14  ;;  %v3478_v2 = vld [vmem:[%s4998_s7 + $0xe4] sm:$0xf0]  ;;  %v3461_v9 = vld [vmem:[%s4998_s7 + $0x64] sm:$0xf]  ;;  %v3476_v13 = vld [vmem:[%s4998_s7 + $0xd4] sm:$0xf0] }
  0x51   : > { %v3164_v4 = vor.u32 %v3478_v2, %v3163_v63  ;;  %v3477_v14 = vld [vmem:[%s4998_s7 + $0xe4] sm:$0xf]  ;;  %v3156_v20 = vor.u32 %v3476_v13, %v3155_v12  ;;  %v3471_v13 = vld [vmem:[%s4998_s7 + $0xb4] sm:$0xf] }
  0x52   : > { %1187 = vmatpush.bf16.msrb.mxu0 %v2960_v25 }
  0x53   : > { %1216 = vmatpush.bf16.msrb.mxu1 %v3024_v26 }
  0x54   : > { %1133 = vmatpush.bf16.msra.mxu2 %v2924_v11  ;;  %v3104_v11 = vor.u32 %v3461_v9, %v3101_v10 }
  0x55   : > { %859 = vmatmul.bf16.gmra.mxu0 %v3398_v49 }
  0x56   : > { %888 = vmatmul.bf16.gmra.mxu1 %v3398_v49  ;;  %1188 = vmatpush.bf16.msrb.mxu0 %v2952_v37  ;;  %v3440_v49 = vld [vmem:[%s4996_s25 + $0xb4] sm:$0xf0] }
  0x57   : > { %1217 = vmatpush.bf16.msrb.mxu1 %v3016_v38  ;;  %v3012_v50 = vor.u32 %v3440_v49, %v3011_v47 }
  0x59   : > { %1159 = vmatpush.bf16.msra.mxu3 %v3012_v50 }
  0x5a   : > { %1189 = vmatpush.bf16.msrb.mxu0 %v2944_v43 }
  0x5b   : > { %1218 = vmatpush.bf16.msrb.mxu1 %v3008_v53  ;;  %v3464_v53 = vld [vmem:[%s4998_s7 + $0x74] sm:$0xf0] }
  0x5c   : > { %v3108_v56 = vor.u32 %v3464_v53, %v3107_v52  ;;  %v3473_v52 = vld [vmem:[%s4998_s7 + $0xc4] sm:$0xf]  ;;  %v3149_v53 = vld [vmem:[%s4998_s7 + $0xc8] sm:$0xf0] }
  0x5d   : > { %1160 = vmatpush.bf16.msra.mxu3 %v3004_v61  ;;  %v3463_v61 = vld [vmem:[%s4998_s7 + $0x74] sm:$0xf] }
  0x5e   : > { %1190 = vmatpush.bf16.msrb.mxu0 %v2936_v62  ;;  %v3109_v62 = vld [vmem:[%s4998_s7 + $0x78] sm:$0xf0]  ;;  %1464 = vmatpush.bf16.msrb.mxu2 %v3108_v56 }
  0x5f   : > { %1219 = vmatpush.bf16.msrb.mxu1 %v3000_v7  ;;  %v3112_v1 = vor.u32 %v3463_v61, %v3109_v62  ;;  %v3176_v7 = vor.u32 %v3479_v3, %v3173_v5  ;;  %v3067_v61 = vld [vmem:[%s4998_s7 + $0x20] sm:$0xf]  ;;  %v3454_v62 = vld [vmem:[%s4998_s7 + $0x24] sm:$0xf0] }
  0x61   : > { %1161 = vmatpush.bf16.msra.mxu3 %v2996_v6  ;;  %v3091_v6 = vld [vmem:[%s4998_s7 + $0x50] sm:$0xf] }
  0x62   : > { %1191 = vmatpush.bf16.msrb.mxu0 %v2928_v16  ;;  %1465 = vmatpush.bf16.msrb.mxu2 %v3100_v0  ;;  %v3092_v16 = vor.u32 %v3460_v8, %v3091_v6  ;;  %v3068_v0 = vor.u32 %v3454_v62, %v3067_v61 }
  0x63   : > { %1220 = vmatpush.bf16.msrb.mxu1 %v2992_v19 }
  0x65   : > { %864 = vmatmul.bf16.gmra.mxu0 %v3399_v22  ;;  %1162 = vmatpush.bf16.msra.mxu3 %v2988_v15 }
  0x66   : > { %893 = vmatmul.bf16.gmra.mxu1 %v3399_v22  ;;  %1522 = vmatpush.bf16.msra.mxu0 %v3112_v1 }
  0x67   : > { %1551 = vmatpush.bf16.msra.mxu1 %v3176_v7  ;;  %1466 = vmatpush.bf16.msrb.mxu2 %v3092_v16  ;;  %v3469_v16 = vld [vmem:[%s4998_s7 + $0xa4] sm:$0xf] }
  0x69   : > { %1493 = vmatpush.bf16.msrb.mxu3 %v3172_v60  ;;  %v3152_v60 = vor.u32 %v3473_v52, %v3149_v53 }
  0x6a   : > { %1523 = vmatpush.bf16.msra.mxu0 %v3104_v11 }
  0x6d   : > { %1494 = vmatpush.bf16.msrb.mxu3 %v3164_v4 }
  0x71   : > { %1495 = vmatpush.bf16.msrb.mxu3 %v3156_v20  ;;  %v3123_v20 = vld [vmem:[%s4998_s7 + $0x90] sm:$0xf] }
  0x75   : > { %869 = vmatmul.bf16.gmra.mxu0 %v3400_v44 }
  0x76   : > { %898 = vmatmul.bf16.gmra.mxu1 %v3400_v44 }
  0xc2   : > { %v855_v21 = vpop.f32.mrf.mxu0 }
  0xc3   : > { %v884_v22 = vpop.f32.mrf.mxu1  ;;  %v856_v25 = vadd.f32 %v855_v21, %v4192_v23  ;;  %v3168_v21 = vor.u32 %v3477_v14, %v3165_v17 }
  0xc4   : > { %v885_v26 = vadd.f32 %v884_v22, %v4194_v24  ;;  %v3459_v22 = vld [vmem:[%s4998_s7 + $0x54] sm:$0xf] }
  0xc5   : > { %v904_v31 = vmax.f32 %v856_v25, 0.0  ;;  %v3093_v25 = vld [vmem:[%s4998_s7 + $0x58] sm:$0xf0]  ;;  %1552 = vmatpush.bf16.msra.mxu1 %v3168_v21  ;;  %v3468_v21 = vld [vmem:[%s4998_s7 + $0x94] sm:$0xf0] }
  0xc6   : > { %v905_v33 = vmax.f32 %v885_v26, 0.0 }
  0xca   : > { %v857_v27 = vpop.f32.mrf.mxu0 }
  0xcb   : > { %v858_v28 = vadd.f32 %v857_v27, %v4192_v23  ;;  %v886_v29 = vpop.f32.mrf.mxu1 }
  0xcc   : > { %v887_v30 = vadd.f32 %v886_v29, %v4194_v24  ;;  %v3458_v29 = vld [vmem:[%s4998_s7 + $0x44] sm:$0xf0] }
  0xcd   : > { %v906_v32 = vmax.f32 %v858_v28, 0.0  ;;  %v3083_v28 = vld [vmem:[%s4998_s7 + $0x40] sm:$0xf] }
  0xce   : > { %v907_v34 = vmax.f32 %v887_v30, 0.0  ;;  %v3096_v30 = vor.u32 %v3459_v22, %v3093_v25  ;;  %v3467_v22 = vld [vmem:[%s4998_s7 + $0x94] sm:$0xf]  ;;  %v3124_v25 = vor.u32 %v3468_v21, %v3123_v20 }
  0xcf   : > { %v920_v35 = vpack.c.bf16 %v906_v32, %v904_v31  ;;  %v3147_v31 = vld [vmem:[%s4998_s7 + $0xc0] sm:$0xf] }
  0xd0   : > { %v921_v36 = vpack.c.bf16 %v907_v34, %v905_v33  ;;  %v3474_v33 = vld [vmem:[%s4998_s7 + $0xc4] sm:$0xf0]  ;;  %v3475_v34 = vld [vmem:[%s4998_s7 + $0xd4] sm:$0xf]  ;;  %1524 = vmatpush.bf16.msra.mxu0 %v3096_v30  ;;  %v3059_v30 = vld [vmem:[%s4998_s7 + $0x10] sm:$0xf] }
  0xd1   : > { %1134 = vmatmul.bf16.vlgmr.msra.gmra.mxu2 %v920_v35  ;;  %1192 = vmatmul.bf16.vlgmr.msrb.gmra.mxu0 %v920_v35  ;;  %v3157_v35 = vld [vmem:[%s4998_s7 + $0xd8] sm:$0xf0] }
  0xd2   : > { %1163 = vmatmul.bf16.vlgmr.msra.gmra.mxu3 %v921_v36  ;;  %1221 = vmatmul.bf16.vlgmr.msrb.gmra.mxu1 %v921_v36  ;;  %v860_v37 = vpop.f32.mrf.mxu0 }
  0xd3   : > { %v889_v38 = vpop.f32.mrf.mxu1  ;;  %v861_v39 = vadd.f32 %v860_v37, %v4192_v23 }
  0xd4   : > { %v890_v40 = vadd.f32 %v889_v38, %v4194_v24  ;;  %v3457_v38 = vld [vmem:[%s4998_s7 + $0x44] sm:$0xf] }
  0xd5   : > { %v908_v45 = vmax.f32 %v861_v39, 0.0  ;;  %v3085_v39 = vld [vmem:[%s4998_s7 + $0x48] sm:$0xf0] }
  0xd6   : > { %v909_v47 = vmax.f32 %v890_v40, 0.0 }
  0xda   : > { %v862_v41 = vpop.f32.mrf.mxu0 }
  0xdb   : > { %v863_v42 = vadd.f32 %v862_v41, %v4192_v23  ;;  %v891_v43 = vpop.f32.mrf.mxu1 }
  0xdc   : > { %v892_v44 = vadd.f32 %v891_v43, %v4194_v24  ;;  %v3084_v43 = vor.u32 %v3458_v29, %v3083_v28  ;;  %v3069_v28 = vld [vmem:[%s4998_s7 + $0x28] sm:$0xf0] }
  0xdd   : > { %v910_v46 = vmax.f32 %v863_v42, 0.0 }
  0xde   : > { %v911_v48 = vmax.f32 %v892_v44, 0.0  ;;  %v3148_v44 = vor.u32 %v3474_v33, %v3147_v31  ;;  %1467 = vmatpush.bf16.msrb.mxu2 %v3084_v43  ;;  %v3452_v31 = vld [vmem:[%s4998_s7 + $0x14] sm:$0xf0]  ;;  %v3051_v43 = vld [vmem:[%s4998_s7] sm:$0xf] }
  0xdf   : > { %v922_v49 = vpack.c.bf16 %v910_v46, %v908_v45  ;;  %v3075_v45 = vld [vmem:[%s4998_s7 + $0x30] sm:$0xf]  ;;  %v3456_v46 = vld [vmem:[%s4998_s7 + $0x34] sm:$0xf0]  ;;  %v3060_v33 = vor.u32 %v3452_v31, %v3059_v30 }
  0xe0   : > { %v923_v50 = vpack.c.bf16 %v911_v48, %v909_v47  ;;  %v3160_v48 = vor.u32 %v3475_v34, %v3157_v35  ;;  %1496 = vmatpush.bf16.msrb.mxu3 %v3148_v44  ;;  %v3076_v58 = vor.u32 %v3456_v46, %v3075_v45  ;;  %v3115_v34 = vld [vmem:[%s4998_s7 + $0x80] sm:$0xf]  ;;  %v3466_v35 = vld [vmem:[%s4998_s7 + $0x84] sm:$0xf0]  ;;  %v3449_v45 = vld [vmem:[%s4998_s7 + $0x4] sm:$0xf] }
  0xe1   : > { %1139 = vmatmul.bf16.gmra.mxu2 %v922_v49  ;;  %1197 = vmatmul.bf16.gmra.mxu0 %v922_v49  ;;  %v3088_v49 = vor.u32 %v3457_v38, %v3085_v39  ;;  %v3117_v38 = vld [vmem:[%s4998_s7 + $0x88] sm:$0xf0]  ;;  %v3450_v44 = vld [vmem:[%s4998_s7 + $0x4] sm:$0xf0] }
  0xe2   : > { %1168 = vmatmul.bf16.gmra.mxu3 %v923_v50  ;;  %1226 = vmatmul.bf16.gmra.mxu1 %v923_v50  ;;  %v865_v51 = vpop.f32.mrf.mxu0  ;;  %v3139_v50 = vld [vmem:[%s4998_s7 + $0xb0] sm:$0xf]  ;;  %v3052_v46 = vor.u32 %v3450_v44, %v3051_v43  ;;  %v3493_v43 = vld [vmem:[%s4948_s9 + $0x64] sm:$0xf]  ;;  %v3229_v44 = vld [vmem:[%s4948_s9 + $0x68] sm:$0xf0] }
  0xe3   : > { %v894_v55 = vpop.f32.mrf.mxu1  ;;  %v866_v15 = vadd.f32 %v865_v51, %v4192_v23  ;;  %v3472_v51 = vld [vmem:[%s4998_s7 + $0xb4] sm:$0xf0]  ;;  %1553 = vmatpush.bf16.msra.mxu1 %v3160_v48  ;;  %1525 = vmatpush.bf16.msra.mxu0 %v3088_v49  ;;  %v960_v49 = vld [vmem:[%s4999_s26] sm:$0x3]  ;;  %s2760_s26 = sshll.u32 %s698_s1, 4  ;;  %s2761_s26 = int_to_ptr.vmem [resolvable:$true] %s2760_s26 }
  0xe4   : > { %v895_v18 = vadd.f32 %v894_v55, %v4194_v24  ;;  %v3077_v55 = vld [vmem:[%s4998_s7 + $0x38] sm:$0xf0]  ;;  %v3140_v59 = vor.u32 %v3472_v51, %v3139_v50  ;;  %1468 = vmatpush.bf16.msrb.mxu2 %v3076_v58  ;;  %v4407_v51 = vperm.slane %v960_v49, 1 }
  0xe5   : > { %v912_v36 = vmax.f32 %v866_v15, 0.0  ;;  %v3080_v63 = vor.u32 %v3455_v54, %v3077_v55  ;;  %v3470_v15 = vld [vmem:[%s4998_s7 + $0xa4] sm:$0xf0]  ;;  %v4410_v55 = vperm.slane %v960_v49, 0  ;;  %v3509_v49 = vld [vmem:[%s4948_s9 + $0xe4] sm:$0xf] }
  0xe6   : > { %v913_v40 = vmax.f32 %v895_v18, 0.0  ;;  %1497 = vmatpush.bf16.msrb.mxu3 %v3140_v59  ;;  %v3133_v18 = vld [vmem:[%s4998_s7 + $0xa8] sm:$0xf0] }
  0xe7   : > { %1554 = vmatpush.bf16.msra.mxu1 %v3152_v60  ;;  %1526 = vmatpush.bf16.msra.mxu0 %v3080_v63 }
  0xe8   : > { %1469 = vmatpush.bf16.msrb.mxu2 %v3068_v0 }
  0xea   : > { %v867_v19 = vpop.f32.mrf.mxu0 }
  0xeb   : > { %v868_v26 = vadd.f32 %v867_v19, %v4192_v23  ;;  %v896_v27 = vpop.f32.mrf.mxu1  ;;  %v3136_v19 = vor.u32 %v3469_v16, %v3133_v18 }
  0xec   : > { %v897_v32 = vadd.f32 %v896_v27, %v4194_v24  ;;  %v3453_v27 = vld [vmem:[%s4998_s7 + $0x24] sm:$0xf]  ;;  %1470 = vmatpush.bf16.msrb.mxu2 %v3060_v33 }
  0xed   : > { %v914_v37 = vmax.f32 %v868_v26, 0.0  ;;  %v3125_v26 = vld [vmem:[%s4998_s7 + $0x98] sm:$0xf0] }
  0xee   : > { %v915_v41 = vmax.f32 %v897_v32, 0.0  ;;  %v3128_v29 = vor.u32 %v3467_v22, %v3125_v26  ;;  %v3072_v32 = vor.u32 %v3453_v27, %v3069_v28 }
  0xef   : > { %v924_v42 = vpack.c.bf16 %v914_v37, %v912_v36  ;;  %v3465_v36 = vld [vmem:[%s4998_s7 + $0x84] sm:$0xf]  ;;  %v3116_v37 = vor.u32 %v3466_v35, %v3115_v34 }
  0xf0   : > { %v925_v47 = vpack.c.bf16 %v915_v41, %v913_v40  ;;  %1527 = vmatpush.bf16.msra.mxu0 %v3072_v32  ;;  %v3120_v39 = vor.u32 %v3465_v36, %v3117_v38  ;;  %v3451_v40 = vld [vmem:[%s4998_s7 + $0x14] sm:$0xf]  ;;  %v3061_v41 = vld [vmem:[%s4998_s7 + $0x18] sm:$0xf0]  ;;  %1471 = vmatpush.bf16.msrb.mxu2 %v3052_v46 }
  0xf1   : > { %1144 = vmatmul.bf16.gmra.mxu2 %v924_v42  ;;  %1202 = vmatmul.bf16.gmra.mxu0 %v924_v42  ;;  %v3064_v42 = vor.u32 %v3451_v40, %v3061_v41  ;;  %v3237_v38 = vld [vmem:[%s4948_s9 + $0x78] sm:$0xf0] }
  0xf2   : > { %1173 = vmatmul.bf16.gmra.mxu3 %v925_v47  ;;  %1231 = vmatmul.bf16.gmra.mxu1 %v925_v47  ;;  %v870_v56 = vpop.f32.mrf.mxu0  ;;  %v3053_v47 = vld [vmem:[%s4998_s7 + $0x8] sm:$0xf0] }
  0xf3   : > { %v899_v57 = vpop.f32.mrf.mxu1  ;;  %v871_v1 = vadd.f32 %v870_v56, %v4192_v23  ;;  %v3056_v48 = vor.u32 %v3449_v45, %v3053_v47 }
  0xf4   : > { %v900_v2 = vadd.f32 %v899_v57, %v4194_v24  ;;  %1528 = vmatpush.bf16.msra.mxu0 %v3064_v42  ;;  %v3301_v42 = vld [vmem:[%s4948_s9 + $0xf8] sm:$0xf0] }
  0xf5   : > { %v916_v7 = vmax.f32 %v871_v1, 0.0 }
  0xf6   : > { %v917_v9 = vmax.f32 %v900_v2, 0.0 }
  0xf8   : > { %1529 = vmatpush.bf16.msra.mxu0 %v3056_v48 }
  0xfa   : > { %v872_v3 = vpop.f32.mrf.mxu0 }
  0xfb   : > { %v873_v4 = vadd.f32 %v872_v3, %v4192_v23  ;;  %v901_v5 = vpop.f32.mrf.mxu1  ;;  %v3141_v23 = vld [vmem:[%s4998_s7 + $0xb8] sm:$0xf0] }
  0xfc   : > { %v902_v6 = vadd.f32 %v901_v5, %v4194_v24  ;;  %v3144_v14 = vor.u32 %v3471_v13, %v3141_v23  ;;  %v3131_v24 = vld [vmem:[%s4998_s7 + $0xa0] sm:$0xf]  ;;  %s2762_s7 = sshll.u32 %s2758_s3, 4  ;;  %s2763_s7 = int_to_ptr.hbm [resolvable:$true] %s2762_s7 }
  0xfd   : > { %v918_v8 = vmax.f32 %v873_v4, 0.0  ;;  %v3132_v17 = vor.u32 %v3470_v15, %v3131_v24 }
  0xfe   : > { %v919_v10 = vmax.f32 %v902_v6, 0.0  ;;  %1555 = vmatpush.bf16.msra.mxu1 %v3144_v14 }
  0xff   : > { %v926_v11 = vpack.c.bf16 %v918_v8, %v916_v7  ;;  %1498 = vmatpush.bf16.msrb.mxu3 %v3132_v17 }
 0x100   : > { %v927_v12 = vpack.c.bf16 %v919_v10, %v917_v9 }
 0x101   : > { %1149 = vmatmul.bf16.gmra.mxu2 %v926_v11  ;;  %1207 = vmatmul.bf16.gmra.mxu0 %v926_v11 }
 0x102   : > { %1178 = vmatmul.bf16.gmra.mxu3 %v927_v12  ;;  %1236 = vmatmul.bf16.gmra.mxu1 %v927_v12 }
 0x103   : > { %1556 = vmatpush.bf16.msra.mxu1 %v3136_v19  ;;  %1499 = vmatpush.bf16.msrb.mxu3 %v3124_v25 }
 0x107   : > { %1557 = vmatpush.bf16.msra.mxu1 %v3128_v29  ;;  %1500 = vmatpush.bf16.msrb.mxu3 %v3116_v37  ;;  %v3495_v37 = vld [vmem:[%s4948_s9 + $0x74] sm:$0xf] }
 0x108   : > { %v3240_v41 = vor.u32 %v3495_v37, %v3237_v38 }
 0x10a   : > { %1860 = vmatpush.bf16.msrb.mxu0 %v3240_v41 }
 0x10b   : > { %1558 = vmatpush.bf16.msra.mxu1 %v3120_v39  ;;  %v3511_v39 = vld [vmem:[%s4948_s9 + $0xf4] sm:$0xf] }
 0x10c   : > { %v3304_v48 = vor.u32 %v3511_v39, %v3301_v42 }
 0x10f   : > { %1889 = vmatpush.bf16.msrb.mxu1 %v3304_v48 }
 0x14e   : > { %v1193_v50 = vpop.f32.mrf.mxu0 }
 0x14f   : > { %v1222_v52 = vpop.f32.mrf.mxu1  ;;  %v1194_v53 = vadd.f32 %v1193_v50, %v4407_v51  ;;  %v3293_v50 = vld [vmem:[%s4948_s9 + $0xe8] sm:$0xf0] }
 0x151   : > { %v1223_v58 = vadd.f32 %v1222_v52, %v1194_v53  ;;  %v3232_v52 = vor.u32 %v3493_v43, %v3229_v44 }
 0x153   : > { %v1243_v63 = vmax.f32 %v1223_v58, 0.0  ;;  %v3221_v58 = vld [vmem:[%s4948_s9 + $0x58] sm:$0xf0]  ;;  %1861 = vmatpush.bf16.msrb.mxu0 %v3232_v52 }
 0x154   : > { %v1135_v54 = vpop.f32.mrf.mxu2 }
 0x155   : > { %v1164_v56 = vpop.f32.mrf.mxu3  ;;  %v1136_v61 = vadd.f32 %v1135_v54, %v4410_v55 }
 0x156   : > { %v1195_v57 = vpop.f32.mrf.mxu0 }
 0x157   : > { %v1196_v59 = vadd.f32 %v1195_v57, %v4407_v51  ;;  %v1224_v60 = vpop.f32.mrf.mxu1  ;;  %v1165_v2 = vadd.f32 %v1164_v56, %v1136_v61  ;;  %v3296_v56 = vor.u32 %v3509_v49, %v3293_v50  ;;  %v3491_v57 = vld [vmem:[%s4948_s9 + $0x54] sm:$0xf]  ;;  %v3299_v61 = vld [vmem:[%s4948_s9 + $0xf0] sm:$0xf] }
 0x159   : > { %v1225_v62 = vadd.f32 %v1224_v60, %v1196_v59  ;;  %v1242_v9 = vmax.f32 %v1165_v2, 0.0  ;;  %v3507_v59 = vld [vmem:[%s4948_s9 + $0xd4] sm:$0xf]  ;;  %v3285_v60 = vld [vmem:[%s4948_s9 + $0xd8] sm:$0xf0]  ;;  %1890 = vmatpush.bf16.msrb.mxu1 %v3296_v56 }
 0x15b   : > { %v1245_v0 = vmax.f32 %v1225_v62, 0.0 }
 0x15c   : > { %v1137_v1 = vpop.f32.mrf.mxu2 }
 0x15d   : > { %v1138_v3 = vadd.f32 %v1137_v1, %v4410_v55  ;;  %v1166_v4 = vpop.f32.mrf.mxu3  ;;  %v1259_v5 = vpack.c.bf16 %v1245_v0, %v1243_v63  ;;  %v3512_v0 = vld [vmem:[%s4948_s9 + $0xf4] sm:$0xf0]  ;;  %v3291_v1 = vld [vmem:[%s4948_s9 + $0xe0] sm:$0xf] }
 0x15e   : > { %v1198_v6 = vpop.f32.mrf.mxu0 }
 0x15f   : > { %v1167_v7 = vadd.f32 %v1166_v4, %v1138_v3  ;;  %v1227_v8 = vpop.f32.mrf.mxu1  ;;  %1501 = vmatmul.bf16.vlgmr.msrb.gmra.mxu3 %v1259_v5  ;;  %1559 = vmatmul.bf16.vlgmr.msra.gmra.mxu1 %v1259_v5  ;;  %v1199_v11 = vadd.f32 %v1198_v6, %v4407_v51  ;;  %v3224_v3 = vor.u32 %v3491_v57, %v3221_v58  ;;  %v3489_v4 = vld [vmem:[%s4948_s9 + $0x44] sm:$0xf]  ;;  %v3510_v6 = vld [vmem:[%s4948_s9 + $0xe4] sm:$0xf0]  ;;  %v3275_v58 = vld [vmem:[%s4948_s9 + $0xc0] sm:$0xf] }
 0x160   : > { %v3300_v5 = vor.u32 %v3512_v0, %v3299_v61  ;;  %v3494_v57 = vld [vmem:[%s4948_s9 + $0x64] sm:$0xf0]  ;;  %v3485_v61 = vld [vmem:[%s4948_s9 + $0x24] sm:$0xf] }
 0x161   : > { %v1244_v10 = vmax.f32 %v1167_v7, 0.0  ;;  %v1228_v24 = vadd.f32 %v1227_v8, %v1199_v11  ;;  %v3288_v11 = vor.u32 %v3507_v59, %v3285_v60  ;;  %1862 = vmatpush.bf16.msrb.mxu0 %v3224_v3  ;;  %v3506_v60 = vld [vmem:[%s4948_s9 + $0xc4] sm:$0xf0] }
 0x162   : > { %1831 = vmatpush.bf16.msra.mxu3 %v3300_v5  ;;  %v3504_v5 = vld [vmem:[%s4948_s9 + $0xb4] sm:$0xf0] }
 0x163   : > { %v1258_v12 = vpack.c.bf16 %v1244_v10, %v1242_v9  ;;  %v1247_v19 = vmax.f32 %v1228_v24, 0.0  ;;  %v3292_v24 = vor.u32 %v3510_v6, %v3291_v1  ;;  %1891 = vmatpush.bf16.msrb.mxu1 %v3288_v11  ;;  %v3219_v1 = vld [vmem:[%s4948_s9 + $0x50] sm:$0xf]  ;;  %v3261_v11 = vld [vmem:[%s4948_s9 + $0xa8] sm:$0xf0] }
 0x164   : > { %v1140_v13 = vpop.f32.mrf.mxu2 }
 0x165   : > { %v1169_v23 = vpop.f32.mrf.mxu3  ;;  %1472 = vmatmul.bf16.vlgmr.msrb.gmra.mxu2 %v1258_v12  ;;  %1530 = vmatmul.bf16.vlgmr.msra.gmra.mxu0 %v1258_v12  ;;  %v1141_v17 = vadd.f32 %v1140_v13, %v4410_v55  ;;  %v3213_v12 = vld [vmem:[%s4948_s9 + $0x48] sm:$0xf0]  ;;  %v3235_v13 = vld [vmem:[%s4948_s9 + $0x70] sm:$0xf] }
 0x166   : > { %v1200_v14 = vpop.f32.mrf.mxu0  ;;  %1832 = vmatpush.bf16.msra.mxu3 %v3292_v24  ;;  %v3203_v24 = vld [vmem:[%s4948_s9 + $0x30] sm:$0xf] }
 0x167   : > { %v1201_v15 = vadd.f32 %v1200_v14, %v4407_v51  ;;  %v1229_v16 = vpop.f32.mrf.mxu1  ;;  %v1170_v22 = vadd.f32 %v1169_v23, %v1141_v17  ;;  %v3496_v23 = vld [vmem:[%s4948_s9 + $0x74] sm:$0xf0] }
 0x169   : > { %v1230_v18 = vadd.f32 %v1229_v16, %v1201_v15  ;;  %v1246_v31 = vmax.f32 %v1170_v22, 0.0  ;;  %v3236_v15 = vor.u32 %v3496_v23, %v3235_v13  ;;  %v3502_v23 = vld [vmem:[%s4948_s9 + $0xa4] sm:$0xf0] }
 0x16b   : > { %v1249_v20 = vmax.f32 %v1230_v18, 0.0  ;;  %v3505_v18 = vld [vmem:[%s4948_s9 + $0xc4] sm:$0xf]  ;;  %1802 = vmatpush.bf16.msra.mxu2 %v3236_v15  ;;  %v3488_v15 = vld [vmem:[%s4948_s9 + $0x34] sm:$0xf0] }
 0x16c   : > { %v1142_v21 = vpop.f32.mrf.mxu2 }
 0x16d   : > { %v1143_v25 = vadd.f32 %v1142_v21, %v4410_v55  ;;  %v1171_v26 = vpop.f32.mrf.mxu3  ;;  %v1261_v27 = vpack.c.bf16 %v1249_v20, %v1247_v19  ;;  %v3277_v19 = vld [vmem:[%s4948_s9 + $0xc8] sm:$0xf0]  ;;  %v3216_v20 = vor.u32 %v3489_v4, %v3213_v12  ;;  %v3267_v4 = vld [vmem:[%s4948_s9 + $0xb0] sm:$0xf]  ;;  %v3259_v12 = vld [vmem:[%s4948_s9 + $0xa0] sm:$0xf] }
 0x16e   : > { %v1203_v28 = vpop.f32.mrf.mxu0  ;;  %v3268_v6 = vor.u32 %v3504_v5, %v3267_v4 }
 0x16f   : > { %v1172_v29 = vadd.f32 %v1171_v26, %v1143_v25  ;;  %v1232_v30 = vpop.f32.mrf.mxu1  ;;  %1506 = vmatmul.bf16.gmra.mxu3 %v1261_v27  ;;  %1564 = vmatmul.bf16.gmra.mxu1 %v1261_v27  ;;  %v1204_v33 = vadd.f32 %v1203_v28, %v4407_v51  ;;  %v3487_v25 = vld [vmem:[%s4948_s9 + $0x34] sm:$0xf]  ;;  %v3205_v26 = vld [vmem:[%s4948_s9 + $0x38] sm:$0xf0]  ;;  %v3280_v27 = vor.u32 %v3505_v18, %v3277_v19  ;;  %v3251_v19 = vld [vmem:[%s4948_s9 + $0x90] sm:$0xf] }
 0x170   : > { %1863 = vmatpush.bf16.msrb.mxu0 %v3216_v20  ;;  %v3253_v18 = vld [vmem:[%s4948_s9 + $0x98] sm:$0xf0] }
 0x171   : > { %v1248_v32 = vmax.f32 %v1172_v29, 0.0  ;;  %v1233_v45 = vadd.f32 %v1232_v30, %v1204_v33  ;;  %v3503_v30 = vld [vmem:[%s4948_s9 + $0xb4] sm:$0xf]  ;;  %v3208_v33 = vor.u32 %v3487_v25, %v3205_v26  ;;  %1892 = vmatpush.bf16.msrb.mxu1 %v3280_v27  ;;  %v3195_v25 = vld [vmem:[%s4948_s9 + $0x20] sm:$0xf] }
 0x172   : > { %v3486_v26 = vld [vmem:[%s4948_s9 + $0x24] sm:$0xf0]  ;;  %v3483_v27 = vld [vmem:[%s4948_s9 + $0x14] sm:$0xf] }
 0x173   : > { %v1260_v34 = vpack.c.bf16 %v1248_v32, %v1246_v31  ;;  %v1251_v62 = vmax.f32 %v1233_v45, 0.0  ;;  %v3269_v31 = vld [vmem:[%s4948_s9 + $0xb8] sm:$0xf0] }
 0x174   : > { %v1145_v35 = vpop.f32.mrf.mxu2  ;;  %1864 = vmatpush.bf16.msrb.mxu0 %v3208_v33  ;;  %v3497_v33 = vld [vmem:[%s4948_s9 + $0x84] sm:$0xf] }
 0x175   : > { %v1174_v36 = vpop.f32.mrf.mxu3  ;;  %1477 = vmatmul.bf16.gmra.mxu2 %v1260_v34  ;;  %1535 = vmatmul.bf16.gmra.mxu0 %v1260_v34  ;;  %v1146_v53 = vadd.f32 %v1145_v35, %v4410_v55 }
 0x176   : > { %v1205_v40 = vpop.f32.mrf.mxu0 }
 0x177   : > { %v1206_v46 = vadd.f32 %v1205_v40, %v4407_v51  ;;  %v1234_v47 = vpop.f32.mrf.mxu1  ;;  %v1175_v7 = vadd.f32 %v1174_v36, %v1146_v53  ;;  %v3272_v36 = vor.u32 %v3503_v30, %v3269_v31  ;;  %v3283_v53 = vld [vmem:[%s4948_s9 + $0xd0] sm:$0xf]  ;;  %v3243_v31 = vld [vmem:[%s4948_s9 + $0x80] sm:$0xf] }
 0x179   : > { %v1235_v54 = vadd.f32 %v1234_v47, %v1206_v46  ;;  %v1250_v21 = vmax.f32 %v1175_v7, 0.0  ;;  %1893 = vmatpush.bf16.msrb.mxu1 %v3272_v36  ;;  %v3211_v7 = vld [vmem:[%s4948_s9 + $0x40] sm:$0xf] }
 0x17b   : > { %v1253_v63 = vmax.f32 %v1235_v54, 0.0  ;;  %v3508_v54 = vld [vmem:[%s4948_s9 + $0xd4] sm:$0xf0] }
 0x17c   : > { %v1147_v2 = vpop.f32.mrf.mxu2  ;;  %v3284_v56 = vor.u32 %v3508_v54, %v3283_v53 }
 0x17d   : > { %v1148_v8 = vadd.f32 %v1147_v2, %v4410_v55  ;;  %v1176_v9 = vpop.f32.mrf.mxu3  ;;  %v1263_v10 = vpack.c.bf16 %v1253_v63, %v1251_v62  ;;  %v3197_v62 = vld [vmem:[%s4948_s9 + $0x28] sm:$0xf0]  ;;  %v3276_v63 = vor.u32 %v3506_v60, %v3275_v58  ;;  %v3492_v2 = vld [vmem:[%s4948_s9 + $0x54] sm:$0xf0] }
 0x17e   : > { %v1208_v14 = vpop.f32.mrf.mxu0  ;;  %1833 = vmatpush.bf16.msra.mxu3 %v3284_v56  ;;  %v3200_v0 = vor.u32 %v3485_v61, %v3197_v62  ;;  %v3220_v3 = vor.u32 %v3492_v2, %v3219_v1 }
 0x17f   : > { %v1177_v16 = vadd.f32 %v1176_v9, %v1148_v8  ;;  %v1237_v17 = vpop.f32.mrf.mxu1  ;;  %1511 = vmatmul.bf16.gmra.mxu3 %v1263_v10  ;;  %1569 = vmatmul.bf16.gmra.mxu1 %v1263_v10  ;;  %v1209_v28 = vadd.f32 %v1208_v14, %v4407_v51  ;;  %v3490_v8 = vld [vmem:[%s4948_s9 + $0x44] sm:$0xf0]  ;;  %v3501_v10 = vld [vmem:[%s4948_s9 + $0xa4] sm:$0xf]  ;;  %v3260_v14 = vor.u32 %v3502_v23, %v3259_v12 }
 0x180   : > { %1865 = vmatpush.bf16.msrb.mxu0 %v3200_v0  ;;  %v3212_v9 = vor.u32 %v3490_v8, %v3211_v7  ;;  %v3264_v13 = vor.u32 %v3501_v10, %v3261_v11 }
 0x181   : > { %v1252_v22 = vmax.f32 %v1177_v16, 0.0  ;;  %v1238_v37 = vadd.f32 %v1237_v17, %v1209_v28  ;;  %v3204_v16 = vor.u32 %v3488_v15, %v3203_v24  ;;  %v3499_v17 = vld [vmem:[%s4948_s9 + $0x94] sm:$0xf]  ;;  %v3189_v28 = vld [vmem:[%s4948_s9 + $0x18] sm:$0xf0] }
 0x182   : > { %1834 = vmatpush.bf16.msra.mxu3 %v3276_v63  ;;  %1894 = vmatpush.bf16.msrb.mxu1 %v3264_v13  ;;  %v3256_v20 = vor.u32 %v3499_v17, %v3253_v18  ;;  %v3192_v30 = vor.u32 %v3483_v27, %v3189_v28 }
 0x183   : > { %v1262_v29 = vpack.c.bf16 %v1252_v22, %v1250_v21  ;;  %v1255_v42 = vmax.f32 %v1238_v37, 0.0  ;;  %v3500_v21 = vld [vmem:[%s4948_s9 + $0x94] sm:$0xf0]  ;;  %v3187_v37 = vld [vmem:[%s4948_s9 + $0x10] sm:$0xf] }
 0x184   : > { %v1150_v32 = vpop.f32.mrf.mxu2  ;;  %v3252_v22 = vor.u32 %v3500_v21, %v3251_v19  ;;  %1866 = vmatpush.bf16.msrb.mxu0 %v3192_v30 }
 0x185   : > { %v1179_v34 = vpop.f32.mrf.mxu3  ;;  %1482 = vmatmul.bf16.gmra.mxu2 %v1262_v29  ;;  %1540 = vmatmul.bf16.gmra.mxu0 %v1262_v29  ;;  %v1151_v40 = vadd.f32 %v1150_v32, %v4410_v55  ;;  %v3196_v29 = vor.u32 %v3486_v26, %v3195_v25  ;;  %v3498_v32 = vld [vmem:[%s4948_s9 + $0x84] sm:$0xf0] }
 0x186   : > { %v1210_v35 = vpop.f32.mrf.mxu0  ;;  %1835 = vmatpush.bf16.msra.mxu3 %v3268_v6  ;;  %1895 = vmatpush.bf16.msrb.mxu1 %v3256_v20 }
 0x187   : > { %v1211_v38 = vadd.f32 %v1210_v35, %v4407_v51  ;;  %v1239_v39 = vpop.f32.mrf.mxu1  ;;  %v1180_v45 = vadd.f32 %v1179_v34, %v1151_v40  ;;  %v3244_v34 = vor.u32 %v3498_v32, %v3243_v31  ;;  %v3245_v35 = vld [vmem:[%s4948_s9 + $0x88] sm:$0xf0]  ;;  %v3481_v40 = vld [vmem:[%s4948_s9 + $0x4] sm:$0xf] }
 0x188   : > { %v3248_v36 = vor.u32 %v3497_v33, %v3245_v35 }
 0x189   : > { %v1240_v41 = vadd.f32 %v1239_v39, %v1211_v38  ;;  %v1254_v50 = vmax.f32 %v1180_v45, 0.0  ;;  %v3484_v38 = vld [vmem:[%s4948_s9 + $0x14] sm:$0xf0] }
 0x18a   : > { %1836 = vmatpush.bf16.msra.mxu3 %v3260_v14  ;;  %v3188_v39 = vor.u32 %v3484_v38, %v3187_v37  ;;  %1896 = vmatpush.bf16.msrb.mxu1 %v3248_v36 }
 0x18b   : > { %v1257_v43 = vmax.f32 %v1240_v41, 0.0  ;;  %v3181_v41 = vld [vmem:[%s4948_s9 + $0x8] sm:$0xf0] }
 0x18c   : > { %v1152_v44 = vpop.f32.mrf.mxu2 }
 0x18d   : > { %v1153_v46 = vadd.f32 %v1152_v44, %v4410_v55  ;;  %v1265_v47 = vpack.c.bf16 %v1257_v43, %v1255_v42  ;;  %v1181_v48 = vpop.f32.mrf.mxu3  ;;  %v3227_v55 = vld [vmem:[%s4948_s9 + $0x60] sm:$0xf]  ;;  %v3184_v43 = vor.u32 %v3481_v40, %v3181_v41  ;;  %v3482_v44 = vld [vmem:[%s4948_s9 + $0x4] sm:$0xf0] }
 0x18e   : > { %v3228_v59 = vor.u32 %v3494_v57, %v3227_v55  ;;  %1837 = vmatpush.bf16.msra.mxu3 %v3252_v22  ;;  %v3179_v42 = vld [vmem:[%s4948_s9] sm:$0xf] }
 0x18f   : > { %v1182_v49 = vadd.f32 %v1181_v48, %v1153_v46  ;;  %1516 = vmatmul.bf16.gmra.mxu3 %v1265_v47  ;;  %1574 = vmatmul.bf16.gmra.mxu1 %v1265_v47  ;;  %v3180_v45 = vor.u32 %v3482_v44, %v3179_v42  ;;  %v1298_v47 = vld [vmem:[%s5000_s8] sm:$0x3] }
 0x190   : > { %1803 = vmatpush.bf16.msra.mxu2 %v3228_v59  ;;  %1867 = vmatpush.bf16.msrb.mxu0 %v3184_v43  ;;  %v4625_v54 = vperm.slane %v1298_v47, 0 }
 0x191   : > { %v1256_v52 = vmax.f32 %v1182_v49, 0.0 }
 0x192   : > { %1838 = vmatpush.bf16.msra.mxu3 %v3244_v34 }
 0x193   : > { %v1264_v51 = vpack.c.bf16 %v1256_v52, %v1254_v50  ;;  %v4622_v50 = vperm.slane %v1298_v47, 1 }
 0x194   : > { %1804 = vmatpush.bf16.msra.mxu2 %v3220_v3 }
 0x195   : > { %1487 = vmatmul.bf16.gmra.mxu2 %v1264_v51  ;;  %1545 = vmatmul.bf16.gmra.mxu0 %v1264_v51 }
 0x198   : > { %1805 = vmatpush.bf16.msra.mxu2 %v3212_v9 }
 0x19c   : > { %1806 = vmatpush.bf16.msra.mxu2 %v3204_v16 }
 0x1a0   : > { %1807 = vmatpush.bf16.msra.mxu2 %v3196_v29 }
 0x1a4   : > { %1808 = vmatpush.bf16.msra.mxu2 %v3188_v39 }
 0x1a8   : > { %1809 = vmatpush.bf16.msra.mxu2 %v3180_v45 }
 0x1dc   : > { %v1560_v46 = vpop.f32.mrf.mxu1 }
 0x1e2   : > { %v1502_v48 = vpop.f32.mrf.mxu3  ;;  %v1531_v49 = vpop.f32.mrf.mxu0 }
 0x1e3   : > { %v1532_v51 = vadd.f32 %v1531_v49, %v4622_v50 }
 0x1e4   : > { %v1562_v52 = vpop.f32.mrf.mxu1 }
 0x1e5   : > { %v1561_v57 = vadd.f32 %v1560_v46, %v1532_v51 }
 0x1e7   : > { %v1581_v62 = vmax.f32 %v1561_v57, 0.0 }
 0x1e8   : > { %v1473_v53 = vpop.f32.mrf.mxu2 }
 0x1e9   : > { %v1474_v60 = vadd.f32 %v1473_v53, %v4625_v54 }
 0x1ea   : > { %v1504_v56 = vpop.f32.mrf.mxu3  ;;  %v1533_v55 = vpop.f32.mrf.mxu0 }
 0x1eb   : > { %v1534_v58 = vadd.f32 %v1533_v55, %v4622_v50  ;;  %v1503_v1 = vadd.f32 %v1502_v48, %v1474_v60 }
 0x1ec   : > { %v1565_v59 = vpop.f32.mrf.mxu1 }
 0x1ed   : > { %v1563_v61 = vadd.f32 %v1562_v52, %v1534_v58  ;;  %v1580_v8 = vmax.f32 %v1503_v1, 0.0 }
 0x1ef   : > { %v1583_v63 = vmax.f32 %v1563_v61, 0.0 }
 0x1f0   : > { %v1475_v0 = vpop.f32.mrf.mxu2 }
 0x1f1   : > { %v1597_v2 = vpack.c.bf16 %v1583_v63, %v1581_v62  ;;  %v1476_v3 = vadd.f32 %v1475_v0, %v4625_v54 }
 0x1f2   : > { %v1507_v4 = vpop.f32.mrf.mxu3  ;;  %v1536_v5 = vpop.f32.mrf.mxu0 }
 0x1f3   : > { %v1505_v6 = vadd.f32 %v1504_v56, %v1476_v3  ;;  %1839 = vmatmul.bf16.vlgmr.msra.gmra.mxu3 %v1597_v2  ;;  %1897 = vmatmul.bf16.vlgmr.msrb.gmra.mxu1 %v1597_v2  ;;  %v1537_v11 = vadd.f32 %v1536_v5, %v4622_v50 }
 0x1f4   : > { %v1567_v7 = vpop.f32.mrf.mxu1 }
 0x1f5   : > { %v1582_v9 = vmax.f32 %v1505_v6, 0.0  ;;  %v1566_v14 = vadd.f32 %v1565_v59, %v1537_v11  ;;  %v3519_v11 = vld [vmem:[%s4950_s11 + $0x30] sm:$0xff] }
 0x1f7   : > { %v1596_v10 = vpack.c.bf16 %v1582_v9, %v1580_v8  ;;  %v1585_v18 = vmax.f32 %v1566_v14, 0.0  ;;  %v3514_v14 = vld [vmem:[%s4950_s11 + $0x8] sm:$0xff] }
 0x1f8   : > { %v1478_v12 = vpop.f32.mrf.mxu2 }
 0x1f9   : > { %1810 = vmatmul.bf16.vlgmr.msra.gmra.mxu2 %v1596_v10  ;;  %1868 = vmatmul.bf16.vlgmr.msrb.gmra.mxu0 %v1596_v10  ;;  %v1479_v15 = vadd.f32 %v1478_v12, %v4625_v54  ;;  %v3517_v12 = vld [vmem:[%s4950_s11 + $0x20] sm:$0xff] }
 0x1fa   : > { %v1509_v13 = vpop.f32.mrf.mxu3  ;;  %v1538_v23 = vpop.f32.mrf.mxu0 }
 0x1fb   : > { %v1539_v24 = vadd.f32 %v1538_v23, %v4622_v50  ;;  %v1508_v21 = vadd.f32 %v1507_v4, %v1479_v15  ;;  %v3515_v23 = vld [vmem:[%s4950_s11 + $0x10] sm:$0xff] }
 0x1fc   : > { %v1570_v17 = vpop.f32.mrf.mxu1 }
 0x1fd   : > { %v1568_v16 = vadd.f32 %v1567_v7, %v1539_v24  ;;  %v1584_v29 = vmax.f32 %v1508_v21, 0.0  ;;  %v3513_v24 = vld [vmem:[%s4950_s11] sm:$0xff] }
 0x1ff   : > { %v1587_v19 = vmax.f32 %v1568_v16, 0.0  ;;  %v1636_v16 = vld [vmem:[%s4949_s10] sm:$0x3] }
 0x200   : > { %v1480_v20 = vpop.f32.mrf.mxu2 }
 0x201   : > { %v1481_v22 = vadd.f32 %v1480_v20, %v4625_v54  ;;  %v1599_v25 = vpack.c.bf16 %v1587_v19, %v1585_v18 }
 0x202   : > { %v1541_v26 = vpop.f32.mrf.mxu0  ;;  %v1512_v28 = vpop.f32.mrf.mxu3 }
 0x203   : > { %v1510_v27 = vadd.f32 %v1509_v13, %v1481_v22  ;;  %1844 = vmatmul.bf16.gmra.mxu3 %v1599_v25  ;;  %1902 = vmatmul.bf16.gmra.mxu1 %v1599_v25  ;;  %v1542_v31 = vadd.f32 %v1541_v26, %v4622_v50  ;;  %v3516_v13 = vld [vmem:[%s4950_s11 + $0x18] sm:$0xff]  ;;  %v4680_v26 = vperm.slane %v1636_v16, 0 }
 0x204   : > { %v1572_v33 = vpop.f32.mrf.mxu1 }
 0x205   : > { %v1586_v30 = vmax.f32 %v1510_v27, 0.0  ;;  %v1571_v36 = vadd.f32 %v1570_v17, %v1542_v31  ;;  %v4677_v17 = vperm.slane %v1636_v16, 1 }
 0x207   : > { %v1598_v32 = vpack.c.bf16 %v1586_v30, %v1584_v29  ;;  %v1589_v41 = vmax.f32 %v1571_v36, 0.0 }
 0x208   : > { %v1483_v34 = vpop.f32.mrf.mxu2 }
 0x209   : > { %1815 = vmatmul.bf16.gmra.mxu2 %v1598_v32  ;;  %1873 = vmatmul.bf16.gmra.mxu0 %v1598_v32  ;;  %v1484_v38 = vadd.f32 %v1483_v34, %v4625_v54 }
 0x20a   : > { %v1543_v35 = vpop.f32.mrf.mxu0  ;;  %v1514_v40 = vpop.f32.mrf.mxu3 }
 0x20b   : > { %v1544_v37 = vadd.f32 %v1543_v35, %v4622_v50  ;;  %v1513_v44 = vadd.f32 %v1512_v28, %v1484_v38 }
 0x20c   : > { %v1575_v47 = vpop.f32.mrf.mxu1 }
 0x20d   : > { %v1573_v39 = vadd.f32 %v1572_v33, %v1544_v37  ;;  %v1588_v52 = vmax.f32 %v1513_v44, 0.0  ;;  %v4689_v37 = vld [vmem:[%s710_s24] ss:$0 sm:$0xff]  ;;  %s5002_s24 = sld [smem:[#allocation13_spill]] }
 0x20f   : > { %v1591_v42 = vmax.f32 %v1573_v39, 0.0 }
 0x210   : > { %v1485_v43 = vpop.f32.mrf.mxu2 }
 0x211   : > { %v1486_v45 = vadd.f32 %v1485_v43, %v4625_v54  ;;  %v1601_v46 = vpack.c.bf16 %v1591_v42, %v1589_v41  ;;  %v3726_v42 = vmov 0  }
 0x212   : > { %v1546_v48 = vpop.f32.mrf.mxu0  ;;  %v1517_v55 = vpop.f32.mrf.mxu3  ;;  %3571 = vset.pattern.permute.xlu0 %v3726_v42  ;;  %3572 = vset.pattern.permute.xlu1 %v3726_v42 }
 0x213   : > { %v1515_v49 = vadd.f32 %v1514_v40, %v1486_v45  ;;  %1849 = vmatmul.bf16.gmra.mxu3 %v1601_v46  ;;  %1907 = vmatmul.bf16.gmra.mxu1 %v1601_v46  ;;  %v1547_v53 = vadd.f32 %v1546_v48, %v4622_v50  ;;  %s707_s0 = scalar_lea.vmem %s5002_s24, %s4635_s27  ;;  %s5003_s27 = sld [smem:[#allocation21_spill]] }
 0x214   : > { %v1577_v61 = vpop.f32.mrf.mxu1  ;;  %3573 = vset.pattern.permute.xlu2 %v3726_v42  ;;  %s3676_s24 = sshra.s32 %s2763_s7, 4  ;;  %s3677_s24 = int_to_ptr.hbm [resolvable:$true] %s3676_s24 }
 0x215   : > { %v1590_v51 = vmax.f32 %v1515_v49, 0.0  ;;  %v1576_v59 = vadd.f32 %v1575_v47, %v1547_v53  ;;  %s3678_s4 = scalar_lea.hbm %s3677_s24, 1  ;;  %p3683_p1 = scmp.lt.s32.totalorder %s3677_s24, %s4961_s22 }
 0x216   : > { %p3679_p12 = scmp.ne.s32.totalorder %s3677_s24, %s3678_s4  ;;  %p3684_p2 = scmp.lt.s32.totalorder %s3682_s6, %s3678_s4 }
 0x217   : > { %v1600_v56 = vpack.c.bf16 %v1590_v51, %v1588_v52  ;;  %v1593_v0 = vmax.f32 %v1576_v59, 0.0 }
 0x218   : > { %v1488_v57 = vpop.f32.mrf.mxu2  ;;  %p3680_p13 = pnand %p3679_p12, %p3881_p5  ;;  %p3685_p3 = por %p3684_p2, %p3683_p1 }
 0x219   : > { %1820 = vmatmul.bf16.gmra.mxu2 %v1600_v56  ;;  %1878 = vmatmul.bf16.gmra.mxu0 %v1600_v56  ;;  %v1489_v62 = vadd.f32 %v1488_v57, %v4625_v54 }
 0x21a   : > { %v1548_v58 = vpop.f32.mrf.mxu0  ;;  %v1519_v6 = vpop.f32.mrf.mxu3  ;;  %p3681_p0 = pneg %p3680_p13 }
 0x21b   : > { %v1549_v60 = vadd.f32 %v1548_v58, %v4622_v50  ;;  %v1518_v3 = vadd.f32 %v1517_v55, %v1489_v62  ;;  %v3520_v50 = vld [vmem:[%s4950_s11 + $0x38] sm:$0xff] }
 0x21c   : > { %2010 = vmatpush.bf16.msrb.mxu2 %v3520_v50  ;;  %p3686_p4 = pnand %p3685_p3, %p3681_p0 }
 0x21d   : > { %v1578_v63 = vadd.f32 %v1577_v61, %v1549_v60  ;;  %v1592_v8 = vmax.f32 %v1518_v3, 0.0 }
 0x21f   : > { %v1595_v1 = vmax.f32 %v1578_v63, 0.0 }
 0x220   : > { %v1490_v2 = vpop.f32.mrf.mxu2  ;;  %2011 = vmatpush.bf16.msrb.mxu2 %v3519_v11 }
 0x221   : > { %v1491_v4 = vadd.f32 %v1490_v2, %v4625_v54  ;;  %v1603_v5 = vpack.c.bf16 %v1595_v1, %v1593_v0  ;;  %v3518_v54 = vld [vmem:[%s4950_s11 + $0x28] sm:$0xff] }
 0x223   : > { %v1520_v7 = vadd.f32 %v1519_v6, %v1491_v4  ;;  %1854 = vmatmul.bf16.gmra.mxu3 %v1603_v5  ;;  %1912 = vmatmul.bf16.gmra.mxu1 %v1603_v5 }
 0x224   : > { %2012 = vmatpush.bf16.msrb.mxu2 %v3518_v54 }
 0x225   : > { %v1594_v9 = vmax.f32 %v1520_v7, 0.0 }
 0x227   : > { %v1602_v10 = vpack.c.bf16 %v1594_v9, %v1592_v8 }
 0x228   : > { %2013 = vmatpush.bf16.msrb.mxu2 %v3517_v12 }
 0x229   : > { %1825 = vmatmul.bf16.gmra.mxu2 %v1602_v10  ;;  %1883 = vmatmul.bf16.gmra.mxu0 %v1602_v10 }
 0x22c   : > { %2014 = vmatpush.bf16.msrb.mxu2 %v3516_v13 }
 0x230   : > { %2015 = vmatpush.bf16.msrb.mxu2 %v3515_v23 }
 0x234   : > { %2016 = vmatpush.bf16.msrb.mxu2 %v3514_v14 }
 0x238   : > { %2017 = vmatpush.bf16.msrb.mxu2 %v3513_v24 }
 0x270   : > { %v1898_v15 = vpop.f32.mrf.mxu1 }
 0x276   : > { %v1840_v18 = vpop.f32.mrf.mxu3  ;;  %v1869_v19 = vpop.f32.mrf.mxu0 }
 0x277   : > { %v1870_v20 = vadd.f32 %v1869_v19, %v4677_v17 }
 0x278   : > { %v1900_v21 = vpop.f32.mrf.mxu1 }
 0x279   : > { %v1899_v22 = vadd.f32 %v1898_v15, %v1870_v20 }
 0x27b   : > { %v2079_v25 = vsub.f32 0.0, %v1899_v22 }
 0x27c   : > { %v1811_v27 = vpop.f32.mrf.mxu2 }
 0x27d   : > { %v2087_v28 = vmul.f32 0.06349207, %v2079_v25  ;;  %v1812_v32 = vadd.f32 %v1811_v27, %v4680_v26 }
 0x27e   : > { %v1842_v29 = vpop.f32.mrf.mxu3  ;;  %v1871_v30 = vpop.f32.mrf.mxu0 }
 0x27f   : > { %v2095_v31 = vmul.f32 1.442695, %v2087_v28  ;;  %v1872_v33 = vadd.f32 %v1871_v30, %v4677_v17  ;;  %v1841_v36 = vadd.f32 %v1840_v18, %v1812_v32 }
 0x280   : > { %v1903_v34 = vpop.f32.mrf.mxu1 }
 0x281   : > { %3594 = vpow2.f32 %v2095_v31  ;;  %v1901_v35 = vadd.f32 %v1900_v21, %v1872_v33  ;;  %v1922_v46 = vadd.f32 %v4689_v37, %v1841_v36 }
 0x283   : > { %v2080_v38 = vsub.f32 0.0, %v1901_v35  ;;  %v1930_v55 = vmax.f32 %v1922_v46, 0.0 }
 0x284   : > { %v1813_v39 = vpop.f32.mrf.mxu2 }
 0x285   : > { %v2088_v40 = vmul.f32 0.06349207, %v2080_v38  ;;  %v1814_v41 = vadd.f32 %v1813_v39, %v4680_v26 }
 0x286   : > { %v1845_v43 = vpop.f32.mrf.mxu3  ;;  %v1874_v44 = vpop.f32.mrf.mxu0 }
 0x287   : > { %v4695_v45 = vpop.eup %3594  ;;  %v2097_v47 = vmul.f32 1.442695, %v2088_v40  ;;  %v1843_v48 = vadd.f32 %v1842_v29, %v1814_v41  ;;  %v1875_v49 = vadd.f32 %v1874_v44, %v4677_v17 }
 0x288   : > { %v1905_v52 = vpop.f32.mrf.mxu1  ;;  %v2119_v51 = vadd.f32 1e-10, %v4695_v45 }
 0x289   : > { %3596 = vpow2.f32 %v2097_v47  ;;  %v1923_v53 = vadd.f32 %v4689_v37, %v1843_v48  ;;  %v1904_v56 = vadd.f32 %v1903_v34, %v1875_v49 }
 0x28a   : > { %3598 = vlog2.f32 %v2119_v51 }
 0x28b   : > { %v1931_v57 = vmax.f32 %v1923_v53, 0.0  ;;  %v2081_v58 = vsub.f32 0.0, %v1904_v56 }
 0x28c   : > { %v1816_v59 = vpop.f32.mrf.mxu2 }
 0x28d   : > { %v1938_v60 = vpack.c.bf16 %v1931_v57, %v1930_v55  ;;  %v2089_v61 = vmul.f32 0.06349207, %v2081_v58  ;;  %v1817_v62 = vadd.f32 %v1816_v59, %v4680_v26 }
 0x28e   : > { %v1847_v63 = vpop.f32.mrf.mxu3  ;;  %v1876_v0 = vpop.f32.mrf.mxu0 }
 0x28f   : > { %v4702_v1 = vpop.eup %3596  ;;  %v2099_v2 = vmul.f32 1.442695, %v2089_v61  ;;  %v1877_v3 = vadd.f32 %v1876_v0, %v4677_v17  ;;  %2018 = vmatmul.bf16.vlgmr.msrb.gmra.mxu2 %v1938_v60  ;;  %v1846_v7 = vadd.f32 %v1845_v43, %v1817_v62 }
 0x290   : > { %v3599_v4 = vpop.eup %3598  ;;  %v2120_v5 = vadd.f32 1e-10, %v4702_v1  ;;  %v1908_v8 = vpop.f32.mrf.mxu1 }
 0x291   : > { %3600 = vpow2.f32 %v2099_v2  ;;  %v1906_v6 = vadd.f32 %v1905_v52, %v1877_v3  ;;  %v2128_v10 = vmul.f32 0.6931472, %v3599_v4  ;;  %v1924_v12 = vadd.f32 %v4689_v37, %v1846_v7 }
 0x292   : > { %3602 = vlog2.f32 %v2120_v5 }
 0x293   : > { %v2082_v9 = vsub.f32 0.0, %v1906_v6  ;;  %v4711_v16 = vpack.c.bf16 %v2128_v10, %v2128_v10  ;;  %v1932_v27 = vmax.f32 %v1924_v12, 0.0 }
 0x294   : > { %v1818_v50 = vpop.f32.mrf.mxu2 }
 0x295   : > { %v2090_v11 = vmul.f32 0.06349207, %v2082_v9  ;;  %v1819_v54 = vadd.f32 %v1818_v50, %v4680_v26  ;;  %v2151_v31 = vunpack.c.l.bf16 %v4711_v16 }
 0x296   : > { %v1879_v13 = vpop.f32.mrf.mxu0  ;;  %v1850_v19 = vpop.f32.mrf.mxu3 }
 0x297   : > { %v4708_v23 = vpop.eup %3600  ;;  %v2101_v14 = vmul.f32 1.442695, %v2090_v11  ;;  %v1848_v24 = vadd.f32 %v1847_v63, %v1819_v54  ;;  %v1880_v15 = vadd.f32 %v1879_v13, %v4677_v17  ;;  %v2159_v44 = vsub.f32 %v2128_v10, %v2151_v31 }
 0x298   : > { %v3603_v18 = vpop.eup %3602  ;;  %v2121_v20 = vadd.f32 1e-10, %v4708_v23  ;;  %v1910_v32 = vpop.f32.mrf.mxu1 }
 0x299   : > { %3604 = vpow2.f32 %v2101_v14  ;;  %v1925_v21 = vadd.f32 %v4689_v37, %v1848_v24  ;;  %v1909_v22 = vadd.f32 %v1908_v8, %v1880_v15  ;;  %v2130_v25 = vmul.f32 0.6931472, %v3603_v18 }
 0x29a   : > { %3606 = vlog2.f32 %v2121_v20 }
 0x29b   : > { %v1933_v28 = vmax.f32 %v1925_v21, 0.0  ;;  %v2083_v29 = vsub.f32 0.0, %v1909_v22  ;;  %v4715_v30 = vpack.c.bf16 %v2130_v25, %v2130_v25 }
 0x29c   : > { %v1821_v33 = vpop.f32.mrf.mxu2 }
 0x29d   : > { %v2091_v34 = vmul.f32 0.06349207, %v2083_v29  ;;  %v1939_v35 = vpack.c.bf16 %v1933_v28, %v1932_v27  ;;  %v2152_v36 = vunpack.c.l.bf16 %v4715_v30  ;;  %v1822_v38 = vadd.f32 %v1821_v33, %v4680_v26 }
 0x29e   : > { %v1881_v39 = vpop.f32.mrf.mxu0  ;;  %v1852_v53 = vpop.f32.mrf.mxu3 }
 0x29f   : > { %v4720_v40 = vpop.eup %3604  ;;  %v2103_v41 = vmul.f32 1.442695, %v2091_v34  ;;  %v1882_v43 = vadd.f32 %v1881_v39, %v4677_v17  ;;  %2023 = vmatmul.bf16.gmra.mxu2 %v1939_v35  ;;  %v2160_v46 = vsub.f32 %v2130_v25, %v2152_v36  ;;  %v1851_v51 = vadd.f32 %v1850_v19, %v1822_v38 }
 0x2a0   : > { %v3607_v47 = vpop.eup %3606  ;;  %v2122_v48 = vadd.f32 1e-10, %v4720_v40  ;;  %v1913_v62 = vpop.f32.mrf.mxu1 }
 0x2a1   : > { %3608 = vpow2.f32 %v2103_v41  ;;  %v1911_v49 = vadd.f32 %v1910_v32, %v1882_v43  ;;  %v2167_v52 = vpack.c.bf16 %v2160_v46, %v2159_v44  ;;  %v2132_v57 = vmul.f32 0.6931472, %v3607_v47 }
 0x2a2   : > { %3610 = vlog2.f32 %v2122_v48  ;;  %v1926_v61 = vadd.f32 %v4689_v37, %v1851_v51 }
 0x2a3   : > { %v2084_v56 = vsub.f32 0.0, %v1911_v49  ;;  %v2183_v55 = vunpack.c.l.b16 %v2167_v52  ;;  %v4729_v5 = vpack.c.bf16 %v2132_v57, %v2132_v57  ;;  %v2184_v11 = vunpack.c.h.b16 %v2167_v52 }
 0x2a4   : > { %v1823_v58 = vpop.f32.mrf.mxu2  ;;  %v1934_v50 = vmax.f32 %v1926_v61, 0.0 }
 0x2a5   : > { %v2092_v59 = vmul.f32 0.06349207, %v2084_v56  ;;  %v1824_v60 = vadd.f32 %v1823_v58, %v4680_v26  ;;  %2192 = vperm.xlu0 %3571, %v2183_v55   ;;  %v2153_v14 = vunpack.c.l.bf16 %v4729_v5 }
 0x2a6   : > { %v1884_v63 = vpop.f32.mrf.mxu0  ;;  %v1855_v24 = vpop.f32.mrf.mxu3 }
 0x2a7   : > { %v4726_v0 = vpop.eup %3608  ;;  %v2105_v2 = vmul.f32 1.442695, %v2092_v59  ;;  %v1853_v3 = vadd.f32 %v1852_v53, %v1824_v60  ;;  %v1885_v4 = vadd.f32 %v1884_v63, %v4677_v17  ;;  %v2161_v29 = vsub.f32 %v2132_v57, %v2153_v14 }
 0x2a8   : > { %v3611_v6 = vpop.eup %3610  ;;  %v2123_v7 = vadd.f32 1e-10, %v4726_v0  ;;  %v1915_v33 = vpop.f32.mrf.mxu1 }
 0x2a9   : > { %3612 = vpow2.f32 %v2105_v2  ;;  %v1927_v8 = vadd.f32 %v4689_v37, %v1853_v3  ;;  %v1914_v9 = vadd.f32 %v1913_v62, %v1885_v4  ;;  %v2134_v10 = vmul.f32 0.6931472, %v3611_v6 }
 0x2aa   : > { %3614 = vlog2.f32 %v2123_v7 }
 0x2ab   : > { %v1935_v54 = vmax.f32 %v1927_v8, 0.0  ;;  %v2085_v12 = vsub.f32 0.0, %v1914_v9  ;;  %v4733_v13 = vpack.c.bf16 %v2134_v10, %v2134_v10 }
 0x2ac   : > { %v1826_v15 = vpop.f32.mrf.mxu2 }
 0x2ad   : > { %v2093_v18 = vmul.f32 0.06349207, %v2085_v12  ;;  %2195 = vperm.xlu0 %3571, %v2184_v11   ;;  %v1940_v19 = vpack.c.bf16 %v1935_v54, %v1934_v50  ;;  %v2154_v20 = vunpack.c.l.bf16 %v4733_v13  ;;  %v1827_v21 = vadd.f32 %v1826_v15, %v4680_v26 }
 0x2ae   : > { %v1886_v22 = vpop.f32.mrf.mxu0  ;;  %v1857_v48 = vpop.f32.mrf.mxu3 }
 0x2af   : > { %v4738_v25 = vpop.eup %3612  ;;  %v2107_v27 = vmul.f32 1.442695, %v2093_v18  ;;  %v1887_v28 = vadd.f32 %v1886_v22, %v4677_v17  ;;  %2028 = vmatmul.bf16.gmra.mxu2 %v1940_v19  ;;  %v2162_v31 = vsub.f32 %v2134_v10, %v2154_v20  ;;  %v1856_v38 = vadd.f32 %v1855_v24, %v1827_v21 }
 0x2b0   : > { %v3615_v32 = vpop.eup %3614  ;;  %v2124_v34 = vadd.f32 1e-10, %v4738_v25  ;;  %v2296_v20 = vunpack.c.l.b16 %v4711_v16 }
 0x2b1   : > { %3616 = vpow2.f32 %v2107_v27  ;;  %v1916_v35 = vadd.f32 %v1915_v33, %v1887_v28  ;;  %v2168_v36 = vpack.c.bf16 %v2162_v31, %v2161_v29  ;;  %v2136_v43 = vmul.f32 0.6931472, %v3615_v32 }
 0x2b2   : > { %3618 = vlog2.f32 %v2124_v34  ;;  %v1928_v17 = vadd.f32 %v4689_v37, %v1856_v38  ;;  %v3354_v27 = vunpack.i.l.s16 %v2296_v20  ;;  %v2298_v29 = vunpack.c.l.b16 %v4729_v5 }
 0x2b3   : > { %v2086_v39 = vsub.f32 0.0, %v1916_v35  ;;  %v2185_v41 = vunpack.c.l.b16 %v2168_v36  ;;  %v2147_v53 = vpack.c.bf16 %v2136_v43, %v2136_v43  ;;  %v2299_v31 = vunpack.c.l.b16 %v4733_v13 }
 0x2b4   : > { %v1828_v44 = vpop.f32.mrf.mxu2  ;;  %v1936_v59 = vmax.f32 %v1928_v17, 0.0  ;;  %v2297_v32 = vunpack.c.l.b16 %v4715_v30  ;;  %v3356_v33 = vunpack.i.l.s16 %v2298_v29  ;;  %v2215_v13 = vlaneseq  ;;  %v3524_v30 = vld [vmem:[%s4959_s20 + $0x18] sm:$0xff]  ;;  %v3523_v17 = vld [vmem:[%s4959_s20 + $0x10] sm:$0xff] }
 0x2b5   : > { %v2094_v46 = vmul.f32 0.06349207, %v2086_v39  ;;  %v1829_v47 = vadd.f32 %v1828_v44, %v4680_v26  ;;  %2198 = vperm.xlu1 %3572, %v2185_v41   ;;  %v2186_v26 = vunpack.c.h.b16 %v2168_v36  ;;  %v2155_v62 = vunpack.c.l.bf16 %v2147_v53  ;;  %2279 = vmatpush.bf16.msrb.mxu3 %v3524_v30 }
 0x2b6   : > { %v3357_v34 = vunpack.i.l.s16 %v2299_v31  ;;  %v3355_v35 = vunpack.i.l.s16 %v2297_v32  ;;  %v2300_v38 = vunpack.c.l.b16 %v2147_v53 }
 0x2b7   : > { %v4744_v49 = vpop.eup %3616  ;;  %v2109_v52 = vmul.f32 1.442695, %v2094_v46  ;;  %v1858_v51 = vadd.f32 %v1857_v48, %v1829_v47  ;;  %v2163_v4 = vsub.f32 %v2136_v43, %v2155_v62  ;;  %v4758_v46 = vshrl.u32 %v2215_v13, 7 }
 0x2b8   : > { %v3619_v56 = vpop.eup %3618  ;;  %v2125_v55 = vadd.f32 1e-10, %v4744_v49  ;;  %v3358_v43 = vunpack.i.l.s16 %v2300_v38 }
 0x2b9   : > { %3620 = vpow2.f32 %v2109_v52  ;;  %v1929_v57 = vadd.f32 %v4689_v37, %v1858_v51  ;;  %v2138_v58 = vmul.f32 0.6931472, %v3619_v56  ;;  %2280 = vmatpush.bf16.msrb.mxu3 %v3523_v17  ;;  %v3522_v51 = vld [vmem:[%s4959_s20 + $0x8] sm:$0xff]  ;;  %v3521_v56 = vld [vmem:[%s4959_s20] sm:$0xff] }
 0x2ba   : > { %3622 = vlog2.f32 %v2125_v55 }
 0x2bb   : > { %v1937_v60 = vmax.f32 %v1929_v57, 0.0  ;;  %v2148_v61 = vpack.c.bf16 %v2138_v58, %v2138_v58 }
 0x2bd   : > { %2201 = vperm.xlu1 %3572, %v2186_v26   ;;  %v1941_v63 = vpack.c.bf16 %v1937_v60, %v1936_v59  ;;  %v2156_v2 = vunpack.c.l.bf16 %v2148_v61  ;;  %v2301_v16 = vunpack.c.l.b16 %v2148_v61  ;;  %2281 = vmatpush.bf16.msrb.mxu3 %v3522_v51  ;;  %v4772_v60 = vand.u32 127, %v2215_v13 }
 0x2bf   : > { %v4748_v3 = vpop.eup %3620  ;;  %2033 = vmatmul.bf16.gmra.mxu2 %v1941_v63  ;;  %v2164_v6 = vsub.f32 %v2138_v58, %v2156_v2  ;;  %v3359_v39 = vunpack.i.l.s16 %v2301_v16  ;;  %v4775_v26 = vadd.s32 4294967288, %v4772_v60  ;;  %v4778_v63 = vadd.s32 4294967280, %v4772_v60 }
 0x2c0   : > { %v3623_v7 = vpop.eup %3622  ;;  %v2126_v8 = vadd.f32 1e-10, %v4748_v3  ;;  %v4781_v2 = vadd.s32 4294967272, %v4772_v60 }
 0x2c1   : > { %v2169_v9 = vpack.c.bf16 %v2164_v6, %v2163_v4  ;;  %v2140_v10 = vmul.f32 0.6931472, %v3623_v7  ;;  %2282 = vmatpush.bf16.msrb.mxu3 %v3521_v56  ;;  %v3592_v4 = vld [vmem:[%s4951_s12] ss:$0 sm:$0xff] }
 0x2c2   : > { %3624 = vlog2.f32 %v2126_v8 }
 0x2c3   : > { %v2187_v37 = vunpack.c.l.b16 %v2169_v9  ;;  %v2149_v50 = vpack.c.bf16 %v2140_v10, %v2140_v10  ;;  %v2188_v12 = vunpack.c.h.b16 %v2169_v9 }
 0x2c5   : > { %2204 = vperm.xlu2 %3573, %v2187_v37   ;;  %v2157_v24 = vunpack.c.l.bf16 %v2149_v50  ;;  %v2302_v36 = vunpack.c.l.b16 %v2149_v50  ;;  %2363 = vmatpush.bf16.msra.mxu3 %v3524_v30 }
 0x2c7   : > { %v2165_v18 = vsub.f32 %v2140_v10, %v2157_v24  ;;  %v3360_v41 = vunpack.i.l.s16 %v2302_v36  ;;  %v4795_v24 = vadd.s32 4294967256, %v4772_v60 }
 0x2c8   : > { %v3625_v11 = vpop.eup %3624 }
 0x2c9   : > { %v2142_v54 = vmul.f32 0.6931472, %v3625_v11  ;;  %2364 = vmatpush.bf16.msra.mxu3 %v3523_v17 }
 0x2cb   : > { %v2150_v14 = vpack.c.bf16 %v2142_v54, %v2142_v54 }
 0x2cd   : > { %2207 = vperm.xlu2 %3573, %v2188_v12   ;;  %v2158_v15 = vunpack.c.l.bf16 %v2150_v14  ;;  %v2303_v5 = vunpack.c.l.b16 %v2150_v14  ;;  %2365 = vmatpush.bf16.msra.mxu3 %v3522_v51 }
 0x2cf   : > { %v2166_v19 = vsub.f32 %v2142_v54, %v2158_v15  ;;  %v3361_v44 = vunpack.i.l.s16 %v2303_v5  ;;  %v4791_v54 = vadd.s32 4294967264, %v4772_v60 }
 0x2d1   : > { %v2170_v21 = vpack.c.bf16 %v2166_v19, %v2165_v18  ;;  %2366 = vmatpush.bf16.msra.mxu3 %v3521_v56 }
 0x2d3   : > { %v2190_v22 = vunpack.c.h.b16 %v2170_v21  ;;  %v2189_v28 = vunpack.c.l.b16 %v2170_v21 }
 0x2d5   : > { %2213 = vperm.xlu1 %3572, %v2190_v22   ;;  %2317 = vperm.xlu2 %3573, %v3354_v27  }
 0x2d6   : > { %2210 = vperm.xlu0 %3571, %v2189_v28   ;;  %v4800_v28 = vadd.s32 4294967240, %v4772_v60 }
 0x2dd   : > { %2323 = vperm.xlu1 %3572, %v3356_v33   ;;  %2326 = vperm.xlu2 %3573, %v3357_v34   ;;  %v4804_v34 = vadd.s32 4294967248, %v4772_v60 }
 0x2de   : > { %2320 = vperm.xlu0 %3571, %v3355_v35  }
 0x2e5   : > { %2332 = vperm.xlu1 %3572, %v3359_v39   ;;  %2335 = vperm.xlu2 %3573, %v3360_v41  }
 0x2e6   : > { %2329 = vperm.xlu0 %3571, %v3358_v43  }
 0x2ed   : > { %3574 = vset.pattern.permute.xlu2 %v4758_v46 }
 0x2ee   : > { %2338 = vperm.xlu0 %3571, %v3361_v44  }
 0x312   : > { %v4761_v47 = vpop.f32.mrf.mxu2 }
 0x313   : > { %v2020_v13 = vadd.f32 %v3592_v4, %v4761_v47 }
 0x315   : > { %v2039_v47 = vsub.f32 0.0, %v2020_v13 }
 0x317   : > { %v2193_v55 = vpop.permute.xlu0 %2192 }
 0x318   : > { %v2217_v10 = vperm.slane %v2193_v55, %v4772_v60 }
 0x31a   : > { %v2021_v48 = vpop.f32.mrf.mxu2 }
 0x31b   : > { %v2022_v32 = vadd.f32 %v3592_v4, %v2021_v48 }
 0x31d   : > { %v2040_v48 = vsub.f32 0.0, %v2022_v32 }
 0x31f   : > { %v2205_v59 = vpop.permute.xlu2 %2204  ;;  %v2196_v62 = vpop.permute.xlu0 %2195 }
 0x320   : > { %v2219_v7 = vperm.slane %v2196_v62, %v4775_v26  ;;  %v2231_v29 = vperm.slane %v2205_v59, %v4791_v54 }
 0x322   : > { %v2024_v52 = vpop.f32.mrf.mxu2  ;;  %v2221_v12 = vsel %vm2220_vm0, %v2219_v7, %v2217_v10  ;;  %v2047_v10 = vmul.f32 1.442695, %v2039_v47 }
 0x323   : > { %v2025_v14 = vadd.f32 %v3592_v4, %v2024_v52 }
 0x325   : > { %v2041_v33 = vsub.f32 0.0, %v2025_v14 }
 0x327   : > { %v2199_v58 = vpop.permute.xlu1 %2198  ;;  %v2208_v8 = vpop.permute.xlu2 %2207 }
 0x328   : > { %v2223_v9 = vperm.slane %v2199_v58, %v4778_v63  ;;  %v2235_v41 = vperm.slane %v2208_v8, %v4795_v24 }
 0x32a   : > { %v2026_v53 = vpop.f32.mrf.mxu2  ;;  %v2225_v18 = vsel %vm2224_vm1, %v2223_v9, %v2221_v12 }
 0x32b   : > { %v2027_v19 = vadd.f32 %v3592_v4, %v2026_v53 }
 0x32d   : > { %v2042_v35 = vsub.f32 0.0, %v2027_v19 }
 0x32f   : > { %v2202_v6 = vpop.permute.xlu1 %2201  ;;  %v2318_v30 = vpop.permute.xlu2 %2317  ;;  %v2053_v53 = vmul.f32 1.442695, %v2042_v35 }
 0x330   : > { %v2227_v50 = vperm.slane %v2202_v6, %v4781_v2  ;;  %v2049_v6 = vmul.f32 1.442695, %v2040_v48  ;;  %v2340_v12 = vperm.slane %v2318_v30, %v4772_v60 }
 0x332   : > { %v2029_v57 = vpop.f32.mrf.mxu2  ;;  %v2229_v22 = vsel %vm2228_vm2, %v2227_v50, %v2225_v18 }
 0x333   : > { %v2030_v11 = vadd.f32 %v3592_v4, %v2029_v57  ;;  %v2233_v16 = vsel %vm2232_vm3, %v2231_v29, %v2229_v22  ;;  %v2051_v57 = vmul.f32 1.442695, %v2041_v33 }
 0x334   : > { %v2237_v52 = vsel %vm2236_vm4, %v2235_v41, %v2233_v16 }
 0x335   : > { %v2043_v27 = vsub.f32 0.0, %v2030_v11 }
 0x337   : > { %v2055_v43 = vmul.f32 1.442695, %v2043_v27  ;;  %v2327_v14 = vpop.permute.xlu2 %2326 }
 0x33a   : > { %v2031_v61 = vpop.f32.mrf.mxu2 }
 0x33b   : > { %v2032_v37 = vadd.f32 %v3592_v4, %v2031_v61 }
 0x33d   : > { %v2044_v20 = vsub.f32 0.0, %v2032_v37 }
 0x33f   : > { %v2057_v36 = vmul.f32 1.442695, %v2044_v20  ;;  %v2336_v48 = vpop.permute.xlu2 %2335 }
 0x342   : > { %v2034_v15 = vpop.f32.mrf.mxu2 }
 0x343   : > { %v2035_v21 = vadd.f32 %v3592_v4, %v2034_v15  ;;  %v4818_v15 = vadd.s32 8, %v4758_v46 }
 0x345   : > { %v2045_v31 = vsub.f32 0.0, %v2035_v21  ;;  %3575 = vset.pattern.permute.xlu1 %v4818_v15 }
 0x347   : > { %v2059_v38 = vmul.f32 1.442695, %v2045_v31  ;;  %v2214_v39 = vpop.permute.xlu1 %2213 }
 0x348   : > { %v2243_v5 = vperm.slane %v2214_v39, %v4800_v28  ;;  %v2211_v44 = vpop.permute.xlu0 %2210 }
 0x349   : > { %3626 = vpow2.f32 %v2059_v38  ;;  %v2239_v17 = vperm.slane %v2211_v44, %v4804_v34  ;;  %v2345_v38 = vperm.slane %v2327_v14, %v4781_v2 }
 0x34a   : > { %v2036_v51 = vpop.f32.mrf.mxu2  ;;  %3628 = vpow2.f32 %v2057_v36 }
 0x34b   : > { %v2241_v56 = vsel %vm2240_vm5, %v2239_v17, %v2237_v52  ;;  %v2037_v55 = vadd.f32 %v3592_v4, %v2036_v51  ;;  %3630 = vpow2.f32 %v2055_v43 }
 0x34c   : > { %v2245_v58 = vsel %vm2244_vm6, %v2243_v5, %v2241_v56  ;;  %3632 = vpow2.f32 %v2053_v53 }
 0x34d   : > { %v2246_v59 = vpack.c.b16 %v2245_v58, %v2245_v58  ;;  %v2046_v61 = vsub.f32 0.0, %v2037_v55  ;;  %3634 = vpow2.f32 %v2051_v57  ;;  %v2351_v58 = vperm.slane %v2336_v48, %v4804_v34 }
 0x34f   : > { %v3627_v62 = vpop.eup %3626  ;;  %v2061_v7 = vmul.f32 1.442695, %v2046_v61  ;;  %3353 = vmatmul.msk.bf16.vlgmr.msrb.gmra.mxu3 %vm2271_vm7, %v2246_v59  ;;  %v2324_v8 = vpop.permute.xlu1 %2323 }
 0x350   : > { %v2321_v9 = vpop.permute.xlu0 %2320  ;;  %v3629_v37 = vpop.eup %3628  ;;  %v2069_v11 = vadd.f32 1.0, %v3627_v62  ;;  %v2343_v19 = vperm.slane %v2324_v8, %v4778_v63 }
 0x351   : > { %3636 = vpow2.f32 %v2061_v7  ;;  %v2341_v4 = vperm.slane %v2321_v9, %v4775_v26  ;;  %v3631_v50 = vpop.eup %3630  ;;  %v2068_v18 = vadd.f32 1.0, %v3629_v37 }
 0x352   : > { %3638 = vpow2.f32 %v2049_v6  ;;  %v3633_v20 = vpop.eup %3632  ;;  %v2067_v21 = vadd.f32 1.0, %v3631_v50 }
 0x353   : > { %3640 = vpow2.f32 %v2047_v10  ;;  %v2342_v22 = vsel %vm2220_vm0, %v2341_v4, %v2340_v12  ;;  %v3635_v27 = vpop.eup %3634  ;;  %v2066_v31 = vadd.f32 1.0, %v3633_v20 }
 0x354   : > { %3642 = vrcp.f32 %v2069_v11  ;;  %v2344_v33 = vsel %vm2224_vm1, %v2343_v19, %v2342_v22  ;;  %v2065_v41 = vadd.f32 1.0, %v3635_v27 }
 0x355   : > { %3644 = vrcp.f32 %v2068_v18  ;;  %v2346_v44 = vsel %vm2228_vm2, %v2345_v38, %v2344_v33  ;;  %v3593_v38 = vld [vmem:[%s4960_s21] ss:$0 sm:$0xff] }
 0x356   : > { %3646 = vrcp.f32 %v2067_v21  ;;  %2453 = vperm.xlu1 %3575, %v3593_v38   ;;  %2447 = vperm.xlu2 %3574, %v3593_v38  }
 0x357   : > { %v3637_v29 = vpop.eup %3636  ;;  %v2333_v35 = vpop.permute.xlu1 %2332 }
 0x358   : > { %v2070_v32 = vadd.f32 1.0, %v3637_v29  ;;  %v2330_v16 = vpop.permute.xlu0 %2329  ;;  %v3639_v36 = vpop.eup %3638  ;;  %v2349_v5 = vperm.slane %v2333_v35, %v4795_v24 }
 0x359   : > { %v2347_v39 = vperm.slane %v2330_v16, %v4791_v54  ;;  %v3641_v43 = vpop.eup %3640  ;;  %v2064_v30 = vadd.f32 1.0, %v3639_v36 }
 0x35a   : > { %3648 = vrcp.f32 %v2070_v32  ;;  %v3643_v13 = vpop.eup %3642  ;;  %v2063_v51 = vadd.f32 1.0, %v3641_v43  ;;  %v2390_v43 = vadd.s32 16, %v4758_v46 }
 0x35b   : > { %3650 = vrcp.f32 %v2066_v31  ;;  %v2348_v17 = vsel %vm2232_vm3, %v2347_v39, %v2346_v44  ;;  %v3645_v52 = vpop.eup %3644  ;;  %v2521_v56 = vpack.c.bf16 %v3643_v13, %v3643_v13  ;;  %v2402_v39 = vadd.s32 32, %v4758_v46 }
 0x35c   : > { %3652 = vrcp.f32 %v2065_v41  ;;  %v3647_v53 = vpop.eup %3646  ;;  %v2350_v55 = vsel %vm2236_vm4, %v2349_v5, %v2348_v17  ;;  %v2520_v59 = vpack.c.bf16 %v3645_v52, %v3645_v52  ;;  %v2396_v41 = vadd.s32 24, %v4758_v46  ;;  %3576 = vset.pattern.permute.xlu0 %v2390_v43 }
 0x35d   : > { %3654 = vrcp.f32 %v2064_v30  ;;  %v2352_v7 = vsel %vm2240_vm5, %v2351_v58, %v2350_v55  ;;  %v2519_v8 = vpack.c.bf16 %v3647_v53, %v3647_v53  ;;  %v2605_v9 = vunpack.c.l.b16 %v2521_v56 }
 0x35e   : > { %3656 = vrcp.f32 %v2063_v51  ;;  %v2604_v14 = vunpack.c.l.b16 %v2520_v59  ;;  %3578 = vset.pattern.permute.xlu1 %v2402_v39  ;;  %3577 = vset.pattern.permute.xlu2 %v2396_v41  ;;  %v2414_v53 = vadd.s32 48, %v4758_v46  ;;  %v2408_v56 = vadd.s32 40, %v4758_v46 }
 0x35f   : > { %v2603_v20 = vunpack.c.l.b16 %v2519_v8  ;;  %v2112_v58 = vsub.f32 1.0, %v4702_v1  ;;  %v2113_v1 = vsub.f32 1.0, %v4708_v23 }
 0x360   : > { %v3649_v57 = vpop.eup %3648  ;;  %v2339_v47 = vpop.permute.xlu0 %2338 }
 0x361   : > { %v2522_v61 = vpack.c.bf16 %v3649_v57, %v3649_v57  ;;  %v2353_v62 = vperm.slane %v2339_v47, %v4800_v28  ;;  %v3651_v6 = vpop.eup %3650  ;;  %v2609_v27 = vpack.c.b16 %v2604_v14, %v2603_v20 }
 0x362   : > { %v3653_v4 = vpop.eup %3652  ;;  %v2518_v11 = vpack.c.bf16 %v3651_v6, %v3651_v6 }
 0x363   : > { %v2606_v37 = vunpack.c.l.b16 %v2522_v61  ;;  %v2354_v10 = vsel %vm2244_vm6, %v2353_v62, %v2352_v7  ;;  %v3655_v18 = vpop.eup %3654  ;;  %v2517_v19 = vpack.c.bf16 %v3653_v4, %v3653_v4 }
 0x364   : > { %v2355_v50 = vpack.c.b16 %v2354_v10, %v2354_v10  ;;  %v3657_v21 = vpop.eup %3656  ;;  %v2516_v22 = vpack.c.bf16 %v3655_v18, %v3655_v18  ;;  %v2602_v29 = vunpack.c.l.b16 %v2518_v11  ;;  %2459 = vperm.xlu0 %3576, %v3593_v38  }
 0x365   : > { %v2610_v12 = vpack.c.b16 %v2606_v37, %v2605_v9  ;;  %v2515_v31 = vpack.c.bf16 %v3657_v21, %v3657_v21  ;;  %v2601_v32 = vunpack.c.l.b16 %v2517_v19  ;;  %v2115_v9 = vsub.f32 1.0, %v4726_v0 }
 0x366   : > { %3362 = vmatmul.msk.bf16.vlgmr.msra.gmra.mxu3 %vm2271_vm7, %v2355_v50  ;;  %v2600_v35 = vunpack.c.l.b16 %v2516_v22  ;;  %2471 = vperm.xlu1 %3578, %v3593_v38  }
 0x367   : > { %2622 = vmatpush.bf16.msrb.mxu3 %v2610_v12  ;;  %v2608_v33 = vpack.c.b16 %v2602_v29, %v2601_v32  ;;  %v2599_v16 = vunpack.c.l.b16 %v2515_v31  ;;  %2465 = vperm.xlu2 %3577, %v3593_v38   ;;  %v2111_v12 = vsub.f32 1.0, %v4695_v45 }
 0x369   : > { %v2607_v36 = vpack.c.b16 %v2600_v35, %v2599_v16  ;;  %v2114_v16 = vsub.f32 1.0, %v4720_v40  ;;  %v2116_v40 = vsub.f32 1.0, %v4738_v25  ;;  %v3374_v25 = vld [vmem:[%s4952_s13] sm:$0xf] }
 0x36b   : > { %2623 = vmatpush.bf16.msrb.mxu3 %v2609_v27 }
 0x36e   : > { %3579 = vset.pattern.permute.xlu1 %v4758_v46 }
 0x36f   : > { %2624 = vmatpush.bf16.msrb.mxu3 %v2608_v33  ;;  %3580 = vset.pattern.permute.xlu2 %v4818_v15  ;;  %v2420_v15 = vadd.s32 56, %v4758_v46 }
 0x373   : > { %2625 = vmatpush.bf16.msrb.mxu3 %v2607_v36 }
 0x3b0   : > { %v2448_v55 = vpop.permute.xlu2 %2447 }
 0x3c1   : > { %v2466_v57 = vpop.permute.xlu2 %2465 }
 0x3c8   : > { %v2454_v59 = vpop.permute.xlu1 %2453 }
 0x3d2   : > { %v2284_v5 = vpop.f32.mrf.mxu3 }
 0x3d6   : > { %v2460_v8 = vpop.permute.xlu0 %2459 }
 0x3d8   : > { %v2472_v10 = vpop.permute.xlu1 %2471 }
 0x3da   : > { %v2286_v44 = vpop.f32.mrf.mxu3 }
 0x3e9   : > { %v2368_v13 = vpop.f32.mrf.mxu3 }
 0x3ea   : > { %v2369_v30 = vadd.f32 %v2368_v13, %v2284_v5 }
 0x3ec   : > { %v2372_v17 = vmul.f32 1.442695, %v2369_v30 }
 0x3ee   : > { %3658 = vpow2.f32 %v2372_v17 }
 0x3f1   : > { %v2370_v48 = vpop.f32.mrf.mxu3 }
 0x3f4   : > { %v3659_v52 = vpop.eup %3658 }
 0x3f5   : > { %v2375_v51 = vperm.slane %v3659_v52, 0 }
 0x3f7   : > { %2392 = vperm.xlu0 %3576, %v2375_v51   ;;  %2386 = vperm.xlu2 %3580, %v2375_v51  }
 0x3f8   : > { %2380 = vperm.xlu1 %3579, %v2375_v51  }
 0x3ff   : > { %3584 = vset.pattern.permute.xlu0 %v2414_v53  ;;  %3582 = vset.pattern.permute.xlu2 %v2402_v39 }
 0x400   : > { %3581 = vset.pattern.permute.xlu1 %v2396_v41  ;;  %v2117_v41 = vsub.f32 1.0, %v4744_v49 }
 0x407   : > { %2416 = vperm.xlu0 %3584, %v2375_v51   ;;  %2404 = vperm.xlu2 %3582, %v2375_v51  }
 0x408   : > { %2398 = vperm.xlu1 %3581, %v2375_v51  }
 0x40f   : > { %3587 = vset.pattern.permute.xlu0 %v2420_v15  ;;  %3585 = vset.pattern.permute.xlu2 %v2420_v15  ;;  %v2118_v15 = vsub.f32 1.0, %v4748_v3  ;;  %v3525_v3 = vld [vmem:[%s4952_s13] sm:$0x70] }
 0x410   : > { %3583 = vset.pattern.permute.xlu1 %v2408_v56 }
 0x417   : > { %2489 = vperm.xlu0 %3587, %v3593_v38   ;;  %2422 = vperm.xlu2 %3585, %v2375_v51  }
 0x418   : > { %2410 = vperm.xlu1 %3583, %v2375_v51  }
 0x41f   : > { %3586 = vset.pattern.permute.xlu2 %v2414_v53  ;;  %3590 = vset.pattern.permute.xlu0 %v3726_v42 }
 0x420   : > { %2477 = vperm.xlu1 %3583, %v3593_v38  }
 0x427   : > { %2483 = vperm.xlu2 %3586, %v3593_v38  }
 0x428   : > { %3588 = vset.pattern.permute.xlu1 %v3726_v42 }
 0x42f   : > { %3589 = vset.pattern.permute.xlu2 %v3726_v42 }
 0x451   : > { %v2387_v46 = vpop.permute.xlu2 %2386 }
 0x452   : > { %v2433_v47 = vmul.f32 %v2387_v46, %v2112_v58 }
 0x454   : > { %v2500_v61 = vmul.f32 %v2454_v59, %v2433_v47 }
 0x456   : > { %v2508_v62 = vpack.c.bf16 %v2500_v61, %v2500_v61 }
 0x458   : > { %v2532_v6 = vunpack.c.l.b16 %v2508_v62 }
 0x45a   : > { %v3364_v7 = vunpack.i.l.s16 %v2532_v6 }
 0x45c   : > { %2555 = vperm.xlu2 %3589, %v3364_v7  }
 0x461   : > { %v2405_v37 = vpop.permute.xlu2 %2404 }
 0x462   : > { %v2436_v4 = vmul.f32 %v2405_v37, %v2115_v9  ;;  %v3375_v9 = vor.u32 %v3525_v3, %v3374_v25 }
 0x464   : > { %v2503_v50 = vmul.f32 %v2472_v10, %v2436_v4  ;;  %v2658_v37 = vsel %vm2656_vm8, %v3375_v9, 0 }
 0x465   : > { %2667 = vmatpush.bf16.msra.mxu3 %v2658_v37 }
 0x466   : > { %v2511_v42 = vpack.c.bf16 %v2503_v50, %v2503_v50 }
 0x468   : > { %v2535_v11 = vunpack.c.l.b16 %v2511_v42 }
 0x469   : > { %v2393_v14 = vpop.permute.xlu0 %2392 }
 0x46a   : > { %v2381_v18 = vpop.permute.xlu1 %2380  ;;  %v3367_v19 = vunpack.i.l.s16 %v2535_v11  ;;  %v2434_v21 = vmul.f32 %v2393_v14, %v2113_v1  ;;  %v3527_v1 = vld [vmem:[%s4954_s15 + $0x8] sm:$0xff] }
 0x46b   : > { %v2432_v20 = vmul.f32 %v2381_v18, %v2111_v12  ;;  %2702 = vmatpush.bf16.msra.mxu0 %v3527_v1 }
 0x46c   : > { %2564 = vperm.xlu0 %3590, %v3367_v19   ;;  %v2501_v29 = vmul.f32 %v2460_v8, %v2434_v21 }
 0x46d   : > { %v2499_v22 = vmul.f32 %v2448_v55, %v2432_v20  ;;  %v3526_v20 = vld [vmem:[%s4954_s15] sm:$0xff] }
 0x46e   : > { %v2509_v31 = vpack.c.bf16 %v2501_v29, %v2501_v29 }
 0x46f   : > { %v2507_v27 = vpack.c.bf16 %v2499_v22, %v2499_v22  ;;  %2703 = vmatpush.bf16.msra.mxu0 %v3526_v20 }
 0x470   : > { %v2533_v33 = vunpack.c.l.b16 %v2509_v31 }
 0x471   : > { %v2531_v0 = vunpack.c.l.b16 %v2507_v27  ;;  %v2423_v35 = vpop.permute.xlu2 %2422 }
 0x472   : > { %v3365_v23 = vunpack.i.l.s16 %v2533_v33  ;;  %v2439_v49 = vmul.f32 %v2423_v35, %v2118_v15 }
 0x473   : > { %v3363_v32 = vunpack.i.l.s16 %v2531_v0 }
 0x475   : > { %2552 = vperm.xlu1 %3588, %v3363_v32  }
 0x479   : > { %v2417_v39 = vpop.permute.xlu0 %2416 }
 0x47a   : > { %v2399_v45 = vpop.permute.xlu1 %2398  ;;  %v2438_v5 = vmul.f32 %v2417_v39, %v2117_v41 }
 0x47b   : > { %v2435_v36 = vmul.f32 %v2399_v45, %v2114_v16 }
 0x47d   : > { %v2502_v38 = vmul.f32 %v2466_v57, %v2435_v36  ;;  %2558 = vperm.xlu1 %3588, %v3365_v23   ;;  %v2646_v36 = vld [vmem:[%s4953_s14] sm:$0x1] }
 0x47f   : > { %v2510_v43 = vpack.c.bf16 %v2502_v38, %v2502_v38 }
 0x481   : > { %v2534_v44 = vunpack.c.l.b16 %v2510_v43  ;;  %v2484_v13 = vpop.permute.xlu2 %2483 }
 0x482   : > { %v2505_v30 = vmul.f32 %v2484_v13, %v2438_v5  ;;  %v3528_v5 = vld [vmem:[%s4957_s18] sm:$0xff] }
 0x483   : > { %v3366_v17 = vunpack.i.l.s16 %v2534_v44  ;;  %v2679_v44 = vld [vmem:[%s4955_s16] sm:$0x1] }
 0x484   : > { %v2513_v48 = vpack.c.bf16 %v2505_v30, %v2505_v30 }
 0x485   : > { %2561 = vperm.xlu2 %3589, %v3366_v17  }
 0x486   : > { %v2537_v52 = vunpack.c.l.b16 %v2513_v48 }
 0x488   : > { %v3369_v53 = vunpack.i.l.s16 %v2537_v52  ;;  %v3727_v52 = vmov 3.0  }
 0x489   : > { %v2490_v55 = vpop.permute.xlu0 %2489  ;;  %3660 = vrcp.f32 %v3727_v52 }
 0x48a   : > { %v2411_v51 = vpop.permute.xlu1 %2410  ;;  %v2506_v46 = vmul.f32 %v2490_v55, %v2439_v49 }
 0x48b   : > { %v2437_v56 = vmul.f32 %v2411_v51, %v2116_v40 }
 0x48c   : > { %v2514_v61 = vpack.c.bf16 %v2506_v46, %v2506_v46 }
 0x48d   : > { %2570 = vperm.xlu2 %3589, %v3369_v53  }
 0x48e   : > { %v2538_v6 = vunpack.c.l.b16 %v2514_v61 }
 0x48f   : > { %v3661_v51 = vpop.eup %3660 }
 0x490   : > { %v3370_v7 = vunpack.i.l.s16 %v2538_v6  ;;  %v2636_v53 = vmul.f32 3.0, %v3661_v51  ;;  %vm2640_vm12 = vweird.f32 %v3661_v51 }
 0x492   : > { %v2478_v57 = vpop.permute.xlu1 %2477  ;;  %v2637_v40 = vsub.f32 1.0, %v2636_v53 }
 0x493   : > { %v2504_v58 = vmul.f32 %v2478_v57, %v2437_v56 }
 0x494   : > { %v2638_v15 = vmul.f32 %v3661_v51, %v2637_v40 }
 0x495   : > { %v2512_v47 = vpack.c.bf16 %v2504_v58, %v2504_v58  ;;  %v2709_v58 = vld [vmem:[%s4956_s17] sm:$0x1] }
 0x496   : > { %v2639_v56 = vadd.f32 %v3661_v51, %v2638_v15 }
 0x497   : > { %v2536_v59 = vunpack.c.l.b16 %v2512_v47 }
 0x498   : > { %v2641_v55 = vsel %vm2640_vm12, %v3661_v51, %v2639_v56 }
 0x499   : > { %v3368_v62 = vunpack.i.l.s16 %v2536_v59  ;;  %v2745_v59 = vld [vmem:[%s5003_s27] sm:$0x1] }
 0x49b   : > { %2567 = vperm.xlu1 %3588, %v3368_v62  }
 0x4a3   : > { %2573 = vperm.xlu1 %3588, %v3370_v7  }
 0x4b6   : > { %v2556_v10 = vpop.permute.xlu2 %2555 }
 0x4b7   : > { %v2576_v12 = vperm.slane %v2556_v10, %v4775_v26 }
 0x4df   : > { %v2562_v50 = vpop.permute.xlu2 %2561 }
 0x4e7   : > { %v2553_v8 = vpop.permute.xlu1 %2552  ;;  %v2571_v27 = vpop.permute.xlu2 %2570 }
 0x4e8   : > { %v2575_v42 = vperm.slane %v2553_v8, %v4772_v60  ;;  %v2580_v60 = vperm.slane %v2562_v50, %v4781_v2  ;;  %v2586_v31 = vperm.slane %v2571_v27, %v4804_v34 }
 0x4ea   : > { %v2577_v14 = vsel %vm2220_vm0, %v2576_v12, %v2575_v42 }
 0x4ef   : > { %v2559_v4 = vpop.permute.xlu1 %2558 }
 0x4f0   : > { %v2578_v11 = vperm.slane %v2559_v4, %v4778_v63  ;;  %v2565_v63 = vpop.permute.xlu0 %2564 }
 0x4f1   : > { %v2582_v22 = vperm.slane %v2565_v63, %v4791_v54  ;;  %v2643_v54 = vld [vmem:[%s707_s0] sm:$0x1] }
 0x4f2   : > { %v2579_v18 = vsel %vm2224_vm1, %v2578_v11, %v2577_v14 }
 0x4f3   : > { %v2581_v26 = vsel %vm2228_vm2, %v2580_v60, %v2579_v18 }
 0x4f4   : > { %v2583_v29 = vsel %vm2232_vm3, %v2582_v22, %v2581_v26 }
 0x50d   : > { %v2568_v19 = vpop.permute.xlu1 %2567 }
 0x50e   : > { %v2584_v21 = vperm.slane %v2568_v19, %v4795_v24  ;;  %v3529_v24 = vld [vmem:[%s4957_s18 + $0x8] sm:$0xff] }
 0x50f   : > { %2737 = vmatpush.bf16.msra.mxu1 %v3529_v24 }
 0x510   : > { %v2585_v0 = vsel %vm2236_vm4, %v2584_v21, %v2583_v29 }
 0x511   : > { %v2587_v2 = vsel %vm2240_vm5, %v2586_v31, %v2585_v0 }
 0x513   : > { %2738 = vmatpush.bf16.msra.mxu1 %v3528_v5 }
 0x515   : > { %v2574_v32 = vpop.permute.xlu1 %2573 }
 0x516   : > { %v2588_v33 = vperm.slane %v2574_v32, %v4800_v28 }
 0x518   : > { %v2589_v35 = vsel %vm2244_vm6, %v2588_v33, %v2587_v2 }
 0x519   : > { %v2590_v16 = vpack.c.b16 %v2589_v35, %v2589_v35 }
 0x51b   : > { %3371 = vmatmul.msk.bf16.vlgmr.msrb.gmra.mxu3 %vm2271_vm7, %v2590_v16 }
 0x52b   : > { %3376 = vmatmul.msk.bf16.vlgmr.msra.gmra.mxu3 %vm2652_vm9, %v2643_v54 }
 0x59e   : > { %v2627_v28 = vpop.f32.mrf.mxu3 }
 0x59f   : > { %v2632_v34 = vsel %vm2631_vm10, %v2627_v28, 0.0 }
 0x5a0   : > { %2633 = vadd.xlane.f32.xlu2 %v2632_v34 }
 0x5a6   : > { %v2629_v45 = vpop.f32.mrf.mxu3 }
 0x5ae   : > { %v2669_v23 = vpop.f32.mrf.mxu3 }
 0x5af   : > { %v2670_v38 = vadd.f32 %v2669_v23, %v2646_v36 }
 0x5b1   : > { %v2673_v39 = vmax.f32 %v2670_v38, 0.0 }
 0x5b3   : > { %v2674_v41 = vpack.c.bf16 %v2673_v39, %v2673_v39 }
 0x5b5   : > { %3385 = vmatmul.msk.bf16.vlgmr.msra.gmra.mxu0 %vm2692_vm11, %v2674_v41 }
 0x5b6   : > { %v2671_v43 = vpop.f32.mrf.mxu3 }
 0x613   : > { %v2634_v57 = vpop.xlane.xlu2 %2633 }
 0x614   : > { %v2642_v49 = vmul.f32 %v2641_v55, %v2634_v57 }
 0x616   : > { %v2710_v46 = vmul.f32 %v2709_v58, %v2642_v49 }
 0x632   : > { %v2705_v13 = vpop.f32.mrf.mxu0 }
 0x633   : > { %v2706_v30 = vadd.f32 %v2705_v13, %v2679_v44 }
 0x635   : > { %v2711_v17 = vpack.c.bf16 %v2706_v30, %v2706_v30 }
 0x637   : > { %3394 = vmatmul.msk.bf16.vlgmr.msra.gmra.mxu1 %vm2692_vm11, %v2711_v17 }
 0x63a   : > { %v2707_v48 = vpop.f32.mrf.mxu0 }
 0x6b4   : > { %v2740_v47 = vpop.f32.mrf.mxu1 }
 0x6b5   : > { %v2744_v61 = vadd.f32 %v2740_v47, %v2710_v46 }
 0x6b7   : > { %v2746_v62 = vadd.f32 %v2745_v59, %v2744_v61 }
 0x6b9   : > { %2748 = vst.msk [vmem:[%s698_s1] sm:$0x1] %vm2747_vm13, %v2746_v62 }
 0x6ba   : > { %3689 = shalt.err (!%p3686_p4)
}
 0x6bb   : > { %3530 = dma.vmem_to_hbm [thread:$0]  (%p3881_p5), %s2761_s26, 16, %s2763_s7, %s2750_s5  }
 0x6bc   : > { %v2742_v6 = vpop.f32.mrf.mxu1 }
 0x6bd PF: > { %s5005_s2 = sld [smem:[#allocation7_spill]] }
 0x6be   : > { %s5006_s27 = sld [smem:[#allocation5_spill]] }
 0x6c3   : > { %p3536_p7 = scmp.ge.s32.totalorder %s5005_s2, 2 }
 0x6c4   : > { %s2774_s8 = sand.u32 1, %s5006_s27  }
 0x6c5   : > { %p3533_p8 = pnand %p3536_p7, %p3885_p6  ;;  %s2775_s0 = scalar_lea.sflag [#allocation3], %s2774_s8 }
 0x6c7   : > { %p3534_p9 = pneg %p3533_p8 }
 0x6c9   : > { %3707 = dma.done.wait (%p3534_p9), %s2775_s0, 16  }
 0x6ca   : > { %3709 = vsyncadd (%p3534_p9), %s2775_s0, 4294967280  ;;  %s5008_s30 = sld [smem:[#allocation8_spill]]  ;;  %s5011_s3 = smov %s3716_s28 }
 0x6cb   : > { %s5009_s24 = sld [smem:[#allocation6_spill]] }
 0x6cc   : > { %s5010_s29 = sld [smem:[#allocation9_spill]] }
 0x6d0   : > { %p32_p10 = scmp.ge.s32.totalorder %s5008_s30, 4  }
 0x6d1   : > { %s5012_s28 = smov %s5009_s24 }
 0x6d2   :  { %34 = sbr.rel (!%p32_p10) target bundleno = 14 (0xe), region = 149 }
 0x6d7   :  { %2780 = vsyncpa [#allocation3], 1 }
 0x6d8   :  { %2782 = vsyncpa [#allocation3 + $0x1], 1 }

</bundles_post_ra>
